<compile_context>
chip_gen: v5e
topology: v5e:2x2
jax: 0.10.0
libtpu: 0.0.40
codegen_flags: <defaults>
</compile_context>

<pallas_src>
import functools

import jax
import jax.numpy as jnp
from jax.experimental import pallas as pl
from jax.experimental.pallas import tpu as pltpu


def _round_up(x, m):
    return ((x + m - 1) // m) * m


def _round_down(x, m):
    return (x // m) * m


def _autoencoder_kernel(x_ref, w1_ref, b1_ref, w2_ref, b2_ref, enc_ref, dec_ref,
                        *, compute_dtype):
    # x : (tb, D_in)
    # w1: (D_in, H)   pre-transposed + pre-cast in the wrapper (grid-invariant)
    # b1: (1, H)      f32
    # w2: (H, D_in)   pre-transposed + pre-cast in the wrapper (grid-invariant)
    # b2: (1, D_in)   f32
    x = x_ref[...].astype(compute_dtype)          # per-tile cast only (streamed operand)

    # Encoder: x @ W1 + b1 -> ReLU. Plain NN-form MXU push, f32 accumulation.
    h = jnp.dot(x, w1_ref[...], preferred_element_type=jnp.float32) + b1_ref[...]
    enc = jnp.maximum(h, 0.0)                      # f32 epilogue (safe on v5e too)
    enc_ref[...] = enc.astype(enc_ref.dtype)

    # Decoder: enc @ W2 + b2 -> Sigmoid.
    d = jnp.dot(enc.astype(compute_dtype), w2_ref[...],
                preferred_element_type=jnp.float32) + b2_ref[...]
    dec_ref[...] = jax.nn.sigmoid(d).astype(dec_ref.dtype)


def autoencoder_forward(x, w1, b1, w2, b2, *, block_b=1024, use_bf16=True,
                        out_dtype=None, min_grid_steps=4):
    """Fused Autoencoder forward.

    x : (B, D_in)
    w1: (H, D_in)  b1: (H,)     -- PyTorch nn.Linear layout (out, in)
    w2: (D_in, H)  b2: (D_in,)
    Returns (encoded (B, H), decoded (B, D_in)).
    """
    B, D_in = x.shape
    H = w1.shape[0]
    assert w1.shape == (H, D_in) and w2.shape == (D_in, H)
    assert b1.shape == (H,) and b2.shape == (D_in,)

    out_dtype = x.dtype if out_dtype is None else jnp.dtype(out_dtype)
    compute_dtype = jnp.bfloat16 if use_bf16 else x.dtype

    # One-time (amortized over B/tb grid steps) relayout + cast of the grid-invariant
    # weights in the wrapper: (out, in) -> (in, out), bf16 operands. The kernel then
    # never re-transposes / re-casts the resident weight blocks per iteration.
    w1t = w1.T.astype(compute_dtype)               # (D_in, H)
    w2t = w2.T.astype(compute_dtype)               # (H, D_in)
    b1_2d = b1.reshape(1, H).astype(jnp.float32)
    b2_2d = b2.reshape(1, D_in).astype(jnp.float32)

    # ---- batch-tile sizing from a VMEM budget (fits v7x's 64 MiB VMEM with headroom) ----
    x_b = jnp.dtype(x.dtype).itemsize
    w_b = jnp.dtype(compute_dtype).itemsize
    o_b = jnp.dtype(out_dtype).itemsize
    weight_vmem = (2 * D_in * H) * w_b + (H + D_in) * 4      # single-buffered residents
    stream_row = D_in * x_b + (H + D_in) * o_b               # per batch row, per buffer
    budget = 40 * 1024 * 1024                                 # conservative total budget
    avail = max(budget - weight_vmem, 2 * 2 * 8 * stream_row)
    tb_vmem = max(8, _round_down(avail // (2 * stream_row), 8))
    # Keep enough grid steps for megacore sharding (v7x) and prefetch/writeback overlap.
    tb_steps = max(8, _round_up(pl.cdiv(B, min_grid_steps), 8))
    tb = max(8, min(_round_up(block_b, 8), tb_vmem, tb_steps, _round_up(B, 8)))

    grid = (pl.cdiv(B, tb),)                                  # ragged tail handled by Pallas

    # Scoped VMEM limit from the actual footprint (v5e default is only 16 MiB);
    # clamp well under v7x's 64 MiB physical VMEM.
    needed = weight_vmem + 2 * tb * stream_row
    vmem_limit = int(min(max(needed * 5 // 4 + (4 << 20), 32 << 20), 60 << 20))

    # Grid-invariant operands: single-buffer (no point double-buffering data that is
    # fetched exactly once); halves weight VMEM on v7x.
    resident = dict(pipeline_mode=pl.Buffered(1))

    enc, dec = pl.pallas_call(
        functools.partial(_autoencoder_kernel, compute_dtype=compute_dtype),
        out_shape=(
            jax.ShapeDtypeStruct((B, H), out_dtype),
            jax.ShapeDtypeStruct((B, D_in), out_dtype),
        ),
        grid_spec=pltpu.PrefetchScalarGridSpec(
            num_scalar_prefetch=0,
            grid=grid,
            in_specs=[
                pl.BlockSpec((tb, D_in), lambda i: (i, 0)),              # x tile: streamed (double-buffered)
                pl.BlockSpec((D_in, H), lambda i: (0, 0), **resident),   # W1^T: VMEM-resident
                pl.BlockSpec((1, H), lambda i: (0, 0), **resident),      # b1
                pl.BlockSpec((H, D_in), lambda i: (0, 0), **resident),   # W2^T: VMEM-resident
                pl.BlockSpec((1, D_in), lambda i: (0, 0), **resident),   # b2
            ],
            out_specs=[
                pl.BlockSpec((tb, H), lambda i: (i, 0)),                 # encoded tile
                pl.BlockSpec((tb, D_in), lambda i: (i, 0)),              # decoded tile
            ],
        ),
        compiler_params=pltpu.CompilerParams(
            dimension_semantics=("parallel",),     # batch axis -> both TCs on v7x
            vmem_limit_bytes=vmem_limit,
        ),
    )(x, w1t, b1_2d, w2t, b2_2d)
    return enc, dec


def _reference_forward(x, w1, b1, w2, b2):
    hp = jax.lax.Precision.HIGHEST
    enc = jnp.maximum(jnp.dot(x, w1.T, precision=hp) + b1, 0.0)
    dec = jax.nn.sigmoid(jnp.dot(enc, w2.T, precision=hp) + b2)
    return enc, dec


if __name__ == "__main__":
    key = jax.random.PRNGKey(0)
    # Small, lane-dense, MXU-friendly demo shapes (multiples of 256 fill a v6e/v7x MXU pass).
    batch, input_dim, hidden_dim = 256, 256, 256

    k_x, k_w1, k_b1, k_w2, k_b2 = jax.random.split(key, 5)
    x = jax.random.normal(k_x, (batch, input_dim), dtype=jnp.float32)

    # PyTorch nn.Linear init shapes: W (out, in), b (out,).
    bound1 = 1.0 / (input_dim ** 0.5)
    w1 = jax.random.uniform(k_w1, (hidden_dim, input_dim), jnp.float32, -bound1, bound1)
    b1 = jax.random.uniform(k_b1, (hidden_dim,), jnp.float32, -bound1, bound1)
    bound2 = 1.0 / (hidden_dim ** 0.5)
    w2 = jax.random.uniform(k_w2, (input_dim, hidden_dim), jnp.float32, -bound2, bound2)
    b2 = jax.random.uniform(k_b2, (input_dim,), jnp.float32, -bound2, bound2)

    enc_ref, dec_ref = _reference_forward(x, w1, b1, w2, b2)

    # Default path: bf16 MXU operands, f32 accumulation/epilogue, grid of 4 steps.
    enc, dec = autoencoder_forward(x, w1, b1, w2, b2)
    jax.block_until_ready((enc, dec))
    assert enc.shape == (batch, hidden_dim)
    assert dec.shape == (batch, input_dim)
    assert jnp.allclose(enc, enc_ref, atol=3e-2, rtol=3e-2)
    assert jnp.allclose(dec, dec_ref, atol=2e-2, rtol=2e-2)

    # Strict f32 path: tight tolerance against the HIGHEST-precision reference.
    enc32, dec32 = autoencoder_forward(x, w1, b1, w2, b2, use_bf16=False)
    jax.block_until_ready((enc32, dec32))
    assert jnp.allclose(enc32, enc_ref, atol=1e-4, rtol=1e-4)
    assert jnp.allclose(dec32, dec_ref, atol=1e-4, rtol=1e-4)

    # Ragged batch: no wrapper padding; cdiv grid + masked tail stores.
    enc_r, dec_r = autoencoder_forward(x[:37], w1, b1, w2, b2, block_b=64)
    jax.block_until_ready((enc_r, dec_r))
    enc_rr, dec_rr = _reference_forward(x[:37], w1, b1, w2, b2)
    assert jnp.allclose(enc_r, enc_rr, atol=3e-2, rtol=3e-2)
    assert jnp.allclose(dec_r, dec_rr, atol=2e-2, rtol=2e-2)

    print("KERNEL_OK")
</pallas_src>

<mosaic_0001>
module attributes {stable_mosaic.version = 11 : i64} {
  func.func @_autoencoder_kernel(%arg0: i32, %arg1: memref<64x256xf32, #tpu.memory_space<vmem>>, %arg2: memref<256x256xbf16, #tpu.memory_space<vmem>>, %arg3: memref<1x256xf32, #tpu.memory_space<vmem>>, %arg4: memref<256x256xbf16, #tpu.memory_space<vmem>>, %arg5: memref<1x256xf32, #tpu.memory_space<vmem>>, %arg6: memref<64x256xf32, #tpu.memory_space<vmem>>, %arg7: memref<64x256xf32, #tpu.memory_space<vmem>>) attributes {dimension_semantics = [#tpu.dimension_semantics<parallel>], iteration_bounds = array<i64: 4>, scalar_prefetch = 0 : i64, scratch_operands = 0 : i64, tpu.core_type = #tpu.core_type<tc>, window_params = [{transform_indices = @transform_0, window_bounds = array<i64: 64, 256>}, {pipeline_mode = #tpu.pipeline_mode<synchronous>, transform_indices = @transform_1, window_bounds = array<i64: 256, 256>}, {pipeline_mode = #tpu.pipeline_mode<synchronous>, transform_indices = @transform_2, window_bounds = array<i64: 1, 256>}, {pipeline_mode = #tpu.pipeline_mode<synchronous>, transform_indices = @transform_3, window_bounds = array<i64: 256, 256>}, {pipeline_mode = #tpu.pipeline_mode<synchronous>, transform_indices = @transform_4, window_bounds = array<i64: 1, 256>}, {transform_indices = @transform_5, window_bounds = array<i64: 64, 256>}, {transform_indices = @transform_6, window_bounds = array<i64: 64, 256>}]} {
    %c0 = arith.constant 0 : index
    %c0_0 = arith.constant 0 : index
    %0 = vector.load %arg1[%c0, %c0_0] : memref<64x256xf32, #tpu.memory_space<vmem>>, vector<64x256xf32>
    %1 = arith.truncf %0 : vector<64x256xf32> to vector<64x256xbf16>
    %c0_1 = arith.constant 0 : index
    %c0_2 = arith.constant 0 : index
    %2 = vector.load %arg2[%c0_1, %c0_2] : memref<256x256xbf16, #tpu.memory_space<vmem>>, vector<256x256xbf16>
    %cst = arith.constant dense<0.000000e+00> : vector<64x256xf32>
    %3 = tpu.matmul %1, %2, %cst {dimension_numbers = #tpu.dot_dimension_numbers<[1], [0], [0], [1], [0, 0, 1, 1], [], []>} : vector<64x256xbf16>, vector<256x256xbf16>, vector<64x256xf32> -> vector<64x256xf32>
    %c0_3 = arith.constant 0 : index
    %c0_4 = arith.constant 0 : index
    %4 = vector.load %arg3[%c0_3, %c0_4] : memref<1x256xf32, #tpu.memory_space<vmem>>, vector<1x256xf32>
    %5 = vector.broadcast %4 : vector<1x256xf32> to vector<64x256xf32>
    %6 = arith.addf %3, %5 : vector<64x256xf32>
    %cst_5 = arith.constant 0.000000e+00 : f32
    %7 = vector.broadcast %cst_5 : f32 to vector<64x256xf32>
    %8 = arith.maximumf %6, %7 : vector<64x256xf32>
    %c0_6 = arith.constant 0 : index
    %c0_7 = arith.constant 0 : index
    %9 = vector.load %arg6[%c0_6, %c0_7] : memref<64x256xf32, #tpu.memory_space<vmem>>, vector<64x256xf32>
    tpu.vector_store %arg6[%c0_6, %c0_7], %8 {strides = array<i32>} : memref<64x256xf32, #tpu.memory_space<vmem>>, vector<64x256xf32>,
    %10 = arith.truncf %8 : vector<64x256xf32> to vector<64x256xbf16>
    %c0_8 = arith.constant 0 : index
    %c0_9 = arith.constant 0 : index
    %11 = vector.load %arg4[%c0_8, %c0_9] : memref<256x256xbf16, #tpu.memory_space<vmem>>, vector<256x256xbf16>
    %cst_10 = arith.constant dense<0.000000e+00> : vector<64x256xf32>
    %12 = tpu.matmul %10, %11, %cst_10 {dimension_numbers = #tpu.dot_dimension_numbers<[1], [0], [0], [1], [0, 0, 1, 1], [], []>} : vector<64x256xbf16>, vector<256x256xbf16>, vector<64x256xf32> -> vector<64x256xf32>
    %c0_11 = arith.constant 0 : index
    %c0_12 = arith.constant 0 : index
    %13 = vector.load %arg5[%c0_11, %c0_12] : memref<1x256xf32, #tpu.memory_space<vmem>>, vector<1x256xf32>
    %14 = vector.broadcast %13 : vector<1x256xf32> to vector<64x256xf32>
    %15 = arith.addf %12, %14 : vector<64x256xf32>
    %16 = arith.negf %15 : vector<64x256xf32>
    %17 = math.exp %16 : vector<64x256xf32>
    %cst_13 = arith.constant 1.000000e+00 : f32
    %18 = vector.broadcast %cst_13 : f32 to vector<64x256xf32>
    %19 = arith.addf %18, %17 : vector<64x256xf32>
    %20 = arith.divf %18, %19 : vector<64x256xf32>
    %c0_14 = arith.constant 0 : index
    %c0_15 = arith.constant 0 : index
    %21 = vector.load %arg7[%c0_14, %c0_15] : memref<64x256xf32, #tpu.memory_space<vmem>>, vector<64x256xf32>
    tpu.vector_store %arg7[%c0_14, %c0_15], %20 {strides = array<i32>} : memref<64x256xf32, #tpu.memory_space<vmem>>, vector<64x256xf32>,
    return
  }
  func.func @transform_0(%arg0: i32) -> (i32, i32) {
    %c0_i32 = arith.constant 0 : i32
    %c0_i32_0 = arith.constant 0 : i32
    return %arg0, %c0_i32 : i32, i32
  }
  func.func @transform_1(%arg0: i32) -> (i32, i32) {
    %c0_i32 = arith.constant 0 : i32
    %c0_i32_0 = arith.constant 0 : i32
    %c0_i32_1 = arith.constant 0 : i32
    return %c0_i32, %c0_i32_0 : i32, i32
  }
  func.func @transform_2(%arg0: i32) -> (i32, i32) {
    %c0_i32 = arith.constant 0 : i32
    %c0_i32_0 = arith.constant 0 : i32
    %c0_i32_1 = arith.constant 0 : i32
    return %c0_i32, %c0_i32_0 : i32, i32
  }
  func.func @transform_3(%arg0: i32) -> (i32, i32) {
    %c0_i32 = arith.constant 0 : i32
    %c0_i32_0 = arith.constant 0 : i32
    %c0_i32_1 = arith.constant 0 : i32
    return %c0_i32, %c0_i32_0 : i32, i32
  }
  func.func @transform_4(%arg0: i32) -> (i32, i32) {
    %c0_i32 = arith.constant 0 : i32
    %c0_i32_0 = arith.constant 0 : i32
    %c0_i32_1 = arith.constant 0 : i32
    return %c0_i32, %c0_i32_0 : i32, i32
  }
  func.func @transform_5(%arg0: i32) -> (i32, i32) {
    %c0_i32 = arith.constant 0 : i32
    %c0_i32_0 = arith.constant 0 : i32
    return %arg0, %c0_i32 : i32, i32
  }
  func.func @transform_6(%arg0: i32) -> (i32, i32) {
    %c0_i32 = arith.constant 0 : i32
    %c0_i32_0 = arith.constant 0 : i32
    return %arg0, %c0_i32 : i32, i32
  }
}

</mosaic_0001>

<bundles_post_ra>
// kernel: tpu_custom_call.1
= control target key start
LH: loop header
LB: loop body
LE: loop exit
PB: predicated region body
PF: predicated region fallthrough
CT: control target
= control target key end

     0   :  { %s2748_s0 = inlined_call_operand.hbm [shape: f32[256,256], index: 0, kind: input, shape index: {}]   ;;  %s2749_s1 = inlined_call_operand.hbm [shape: bf16[256,256], index: 1, kind: input, shape index: {}]   ;;  %s2750_s2 = inlined_call_operand.hbm [shape: f32[1,256], index: 2, kind: input, shape index: {}]   ;;  %s2751_s3 = inlined_call_operand.hbm [shape: bf16[256,256], index: 3, kind: input, shape index: {}]   ;;  %s2752_s4 = inlined_call_operand.vmem [shape: f32[1,256], index: 4, kind: input, shape index: {}]   ;;  %s2753_s5 = inlined_call_operand.hbm [shape: f32[256,256], index: 5, kind: output, shape index: {0}]   ;;  %s2754_s6 = inlined_call_operand.hbm [shape: f32[256,256], index: 6, kind: output, shape index: {1}]  }
   0x1   :  { %2755 = sst [smem:[#allocation18_spill]] %s2748_s0 }
   0x2   :  { %2756 = sst [smem:[#allocation19_spill]] %s2749_s1 }
   0x3   :  { %12 = vsyncpa [#allocation3], 0 }
   0x4   :  { %14 = vsyncpa [#allocation3 + $0x1], 0 }
   0x5   :  { %15 = vsyncpa [#allocation6], 0 }
   0x6   :  { %16 = vsyncpa [#allocation9], 0 }
   0x7   :  { %17 = vsyncpa [#allocation4], 0 }
   0x8   :  { %19 = vsyncpa [#allocation4 + $0x1], 0 }
   0x9   :  { %20 = vsyncpa [#allocation12], 0 }
   0xa   :  { %22 = vsyncpa [#allocation12 + $0x1], 0  ;;  %s2315_s21 = smov 0   ;;  %s2317_s22 = smov 0  }
   0xb   :  { %s2319_s23 = smov 0   ;;  %s2321_s24 = smov 0  }
   0xc LB: > { %s2336_s25 = sadd.s32 4294967295, %s2269_s24   ;;  %s1522_s26 = sadd.s32 4294967294, %s2269_s24   ;;  %s2269_s24 = sphi %s2321_s24, %s2782_s24   ;;  %s2265_s23 = sphi %s2319_s23, %s2781_s23   ;;  %s2261_s22 = sphi %s2317_s22, %s2780_s22   ;;  %s2257_s21 = sphi %s2315_s21, %s2779_s21  }
   0xd   : > { %p48_p0 = scmp.ne.s32.totalorder %s2261_s22, %s2257_s21  ;;  %p49_p1 = scmp.eq.s32.totalorder %s2336_s25, 0 }
   0xe   : > { %p156_p2 = scmp.eq.s32.totalorder %s2336_s25, 3  ;;  %p162_p3 = scmp.eq.s32.totalorder %s1522_s26, 3 }
   0xf   : > { %p2345_p4 = por %p49_p1, %p48_p0  ;;  %p1523_p5 = scmp.ge.s32.totalorder %s2269_s24, 1 }
  0x10   : > { %p2350_p6 = por %p162_p3, %p48_p0  ;;  %p195_p7 = scmp.lt.s32.totalorder %s2269_s24, 5 }
  0x11   : > { %s2759_s1 = sld [smem:[#allocation19_spill]]  ;;  %s2271_s9 = smov [#allocation5]  }
  0x12   : > { %p2358_p8 = pnand %p1523_p5, %p195_p7  ;;  %s208_s10 = sshll.u32 %s2271_s9, 4  ;;  %s209_s10 = int_to_ptr.vmem [resolvable:$true] %s208_s10 }
  0x13   : > { %s221_s14 = sshll.u32 %s2750_s2, 4  ;;  %s2272_s15 = smov 128   ;;  %s222_s14 = int_to_ptr.hbm [resolvable:$true] %s221_s14 }
  0x14   : > { %p1909_p9 = pneg %p2358_p8  ;;  %s2273_s16 = smov 8  }
  0x15   : > { %s2274_s17 = smov [#allocation7]   ;;  %s232_s26 = sshll.u32 %s2751_s3, 4  ;;  %s233_s26 = int_to_ptr.hbm [resolvable:$true] %s232_s26 }
  0x16   : > { %p2366_p10 = pnand %p1909_p9, %p49_p1  ;;  %s223_s18 = sshll.u32 %s2274_s17, 4  ;;  %s224_s18 = int_to_ptr.vmem [resolvable:$true] %s223_s18 }
  0x17   : > { %s206_s7 = sshll.u32 %s2759_s1, 4  ;;  %s2275_s29 = smov [#allocation8]   ;;  %s207_s7 = int_to_ptr.hbm [resolvable:$true] %s206_s7 }
  0x18   : > { %1912 = dma.hbm_to_vmem [thread:$0]  (!%p2366_p10), %s207_s7, 4096, %s209_s10, [#allocation6], %s2272_s15, %s2272_s15, %s2273_s16  }
  0x19   : > { %1915 = dma.hbm_to_vmem [thread:$0]  (!%p2366_p10), %s222_s14, 32, %s224_s18, [#allocation6]  }
  0x1a   : > { %s234_s30 = sshll.u32 %s2275_s29, 4  ;;  %s2381_s7 = sadd.s32 1, %s2269_s24   ;;  %s235_s30 = int_to_ptr.vmem [resolvable:$true] %s234_s30 }
  0x1b   : > { %1918 = dma.hbm_to_vmem [thread:$0]  (!%p2366_p10), %s233_s26, 4096, %s235_s30, [#allocation9], %s2272_s15, %s2272_s15, %s2273_s16  }
  0x1c   : > { %s32_s9 = ssub.s32 %s2269_s24, %s2381_s7  ;;  %s35_s10 = sadd.s32 1, %s2265_s23 }
  0x1d   : > { %p33_p11 = scmp.eq.s32.totalorder %s32_s9, 0  ;;  %p42_p12 = scmp.ne.s32.totalorder %s2265_s23, %s2261_s22 }
  0x1e   : > { %p43_p13 = scmp.eq.s32.totalorder %s2269_s24, 0  ;;  %p1933_p0 = scmp.lt.s32.totalorder %s2269_s24, 4 }
  0x1f   : > { %s2393_s12 = scalar_select %p33_p11, %s2265_s23, %s35_s10  }
  0x20   : > { %p44_p3 = por %p43_p13, %p42_p12  ;;  %p2397_p5 = por %p156_p2, %p42_p12 }
  0x21   : > { %s251_s14 = sand.u32 1, %s2265_s23   ;;  %s1822_s17 = sshll.u32 %s2269_s24, 7 }
  0x22   : > { %s1528_s11 = sshll.u32 %s251_s14, 7  ;;  %s2763_s0 = sld [smem:[#allocation18_spill]] }
  0x23   : > { %s255_s20 = scalar_lea.vmem [#allocation2], %s1528_s11  ;;  %p2408_p7 = pnand %p1933_p0, %p44_p3 }
  0x24   : > { %s264_s26 = sshll.u32 %s255_s20, 4  ;;  %s252_s30 = scalar_lea.sflag [#allocation3], %s251_s14  ;;  %s265_s26 = int_to_ptr.vmem [resolvable:$true] %s264_s26 }
  0x25   : > { %p2137_p9 = pneg %p2408_p7 }
  0x28   : > { %s261_s16 = scalar_lea.hbm %s2763_s0, %s1822_s17  ;;  %s2140_s18 = scalar_lea.hbm %s2763_s0, 512 }
  0x29   : > { %s262_s19 = sshll.u32 %s261_s16, 4  ;;  %s263_s19 = int_to_ptr.hbm [resolvable:$true] %s262_s19 }
  0x2a   : > { %s2133_s9 = sshra.s32 %s263_s19, 4  ;;  %s2134_s9 = int_to_ptr.hbm [resolvable:$true] %s2133_s9 }
  0x2b   : > { %s2135_s10 = scalar_lea.hbm %s2134_s9, 128  ;;  %p2141_p12 = scmp.lt.s32.totalorder %s2134_s9, %s2763_s0 }
  0x2c   : > { %p2136_p2 = scmp.ne.s32.totalorder %s2134_s9, %s2135_s10  ;;  %p2142_p13 = scmp.lt.s32.totalorder %s2140_s18, %s2135_s10 }
  0x2e   : > { %p2138_p10 = pnand %p2137_p9, %p2136_p2  ;;  %p2143_p0 = por %p2142_p13, %p2141_p12 }
  0x30   : > { %p2139_p11 = pneg %p2138_p10 }
  0x32   : > { %p2144_p3 = pnand %p2143_p0, %p2139_p11 }
  0x34   : > { %2147 = shalt.err (!%p2144_p3)
}
  0x35   : > { %s2276_s14 = smov 256   ;;  %s2277_s20 = smov 16  }
  0x36   : > { %1922 = dma.hbm_to_vmem [thread:$0]  (!%p2408_p7), %s263_s19, 2048, %s265_s26, %s252_s30, %s2276_s14, %s2276_s14, %s2277_s20  }
  0x37   : > { %276 = sbr.rel (%p2358_p8) target bundleno = 470 (0x1d6), region = 40  ;;  %s2425_s17 = sand.u32 (!%p2358_p8), 1, %s2261_s22  }
  0x38   : > { %s2428_s11 = sshll.u32 (!%p2358_p8), %s2425_s17, 7  ;;  %s279_s9 = scalar_lea.sflag (!%p2358_p8), [#allocation3], %s2425_s17 }
  0x39   : > { %s2432_s10 = scalar_lea.vmem (!%p2358_p8), [#allocation2], %s2428_s11 }
  0x3c   : > { %2236 = dma.done.wait (%p2345_p4), %s279_s9, 2048  }
  0x3d   : > { %2238 = vsyncadd (%p2345_p4), %s279_s9, 4294965248 }
  0x3e   : > { %2240 = dma.done.wait (%p49_p1), [#allocation6], 4128  }
  0x3f   : > { %2242 = vsyncadd (%p49_p1), [#allocation6], 4294963168 }
  0x40   : > { %2244 = dma.done.wait (%p49_p1), [#allocation9], 4096  }
  0x41   : > { %2246 = vsyncadd (%p49_p1), [#allocation9], 4294963200  ;;  %v1597_v0 = vld [vmem:[#allocation5 + $0x70] sm:$0xf]  ;;  %v1838_v1 = vld [vmem:[#allocation5 + $0x74] sm:$0xf0] }
  0x42   : > { %v1661_v2 = vld [vmem:[#allocation5 + $0xf0] sm:$0xf]  ;;  %v1598_v3 = vor.u32 %v1838_v1, %v1597_v0  ;;  %v1854_v4 = vld [vmem:[#allocation5 + $0xf4] sm:$0xf0]  ;;  %v1837_v5 = vld [vmem:[#allocation5 + $0x74] sm:$0xf] }
  0x43   : > { %v1599_v6 = vld [vmem:[#allocation5 + $0x78] sm:$0xf0]  ;;  %v1662_v7 = vor.u32 %v1854_v4, %v1661_v2  ;;  %v1853_v9 = vld [vmem:[#allocation5 + $0xf4] sm:$0xf]  ;;  %v1589_v11 = vld [vmem:[#allocation5 + $0x60] sm:$0xf] }
  0x44   : > { %v1602_v8 = vor.u32 %v1837_v5, %v1599_v6  ;;  %v1663_v10 = vld [vmem:[#allocation5 + $0xf8] sm:$0xf0]  ;;  %557 = vmatpush.bf16.msra.mxu0 %v1598_v3  ;;  %v1836_v13 = vld [vmem:[#allocation5 + $0x64] sm:$0xf0]  ;;  %v1653_v14 = vld [vmem:[#allocation5 + $0xe0] sm:$0xf] }
  0x45   : > { %v1666_v12 = vor.u32 %v1853_v9, %v1663_v10  ;;  %v1852_v15 = vld [vmem:[#allocation5 + $0xe4] sm:$0xf0]  ;;  %586 = vmatpush.bf16.msra.mxu1 %v1662_v7  ;;  %v1590_v16 = vor.u32 %v1836_v13, %v1589_v11  ;;  %v1835_v18 = vld [vmem:[#allocation5 + $0x64] sm:$0xf]  ;;  %v1591_v19 = vld [vmem:[#allocation5 + $0x68] sm:$0xf0] }
  0x46   : > { %615 = vmatpush.bf16.msra.mxu2 %v1602_v8  ;;  %v1654_v17 = vor.u32 %v1852_v15, %v1653_v14  ;;  %v1851_v20 = vld [vmem:[#allocation5 + $0xe4] sm:$0xf]  ;;  %v1594_v21 = vor.u32 %v1835_v18, %v1591_v19  ;;  %v1655_v22 = vld [vmem:[#allocation5 + $0xe8] sm:$0xf0]  ;;  %v1581_v23 = vld [vmem:[#allocation5 + $0x50] sm:$0xf] }
  0x47   : > { %644 = vmatpush.bf16.msra.mxu3 %v1666_v12  ;;  %v1834_v24 = vld [vmem:[#allocation5 + $0x54] sm:$0xf0]  ;;  %v1658_v25 = vor.u32 %v1851_v20, %v1655_v22  ;;  %v1645_v26 = vld [vmem:[#allocation5 + $0xd0] sm:$0xf]  ;;  %v1833_v28 = vld [vmem:[#allocation5 + $0x54] sm:$0xf] }
  0x48   : > { %v1850_v27 = vld [vmem:[#allocation5 + $0xd4] sm:$0xf0]  ;;  %558 = vmatpush.bf16.msra.mxu0 %v1590_v16  ;;  %v1582_v29 = vor.u32 %v1834_v24, %v1581_v23  ;;  %v1583_v30 = vld [vmem:[#allocation5 + $0x58] sm:$0xf0]  ;;  %v1849_v31 = vld [vmem:[#allocation5 + $0xd4] sm:$0xf] }
  0x49   : > { %v1647_v32 = vld [vmem:[#allocation5 + $0xd8] sm:$0xf0]  ;;  %587 = vmatpush.bf16.msra.mxu1 %v1654_v17  ;;  %v1646_v33 = vor.u32 %v1850_v27, %v1645_v26  ;;  %v1586_v34 = vor.u32 %v1833_v28, %v1583_v30  ;;  %v1573_v35 = vld [vmem:[#allocation5 + $0x40] sm:$0xf]  ;;  %v1832_v36 = vld [vmem:[#allocation5 + $0x44] sm:$0xf0] }
  0x4a   : > { %616 = vmatpush.bf16.msra.mxu2 %v1594_v21  ;;  %v1637_v37 = vld [vmem:[#allocation5 + $0xc0] sm:$0xf]  ;;  %v1650_v38 = vor.u32 %v1849_v31, %v1647_v32  ;;  %v1848_v39 = vld [vmem:[#allocation5 + $0xc4] sm:$0xf0]  ;;  %v1831_v40 = vld [vmem:[#allocation5 + $0x44] sm:$0xf]  ;;  %v1574_v44 = vor.u32 %v1832_v36, %v1573_v35 }
  0x4b   : > { %645 = vmatpush.bf16.msra.mxu3 %v1658_v25  ;;  %v1575_v41 = vld [vmem:[#allocation5 + $0x48] sm:$0xf0]  ;;  %v1847_v42 = vld [vmem:[#allocation5 + $0xc4] sm:$0xf]  ;;  %v1638_v45 = vor.u32 %v1848_v39, %v1637_v37  ;;  %v1565_v47 = vld [vmem:[#allocation5 + $0x30] sm:$0xf] }
  0x4c   : > { %v1639_v43 = vld [vmem:[#allocation5 + $0xc8] sm:$0xf0]  ;;  %559 = vmatpush.bf16.msra.mxu0 %v1582_v29  ;;  %v1578_v46 = vor.u32 %v1831_v40, %v1575_v41  ;;  %v1830_v48 = vld [vmem:[#allocation5 + $0x34] sm:$0xf0]  ;;  %v1629_v49 = vld [vmem:[#allocation5 + $0xb0] sm:$0xf] }
  0x4d   : > { %588 = vmatpush.bf16.msra.mxu1 %v1646_v33  ;;  %v1642_v50 = vor.u32 %v1847_v42, %v1639_v43  ;;  %v1846_v51 = vld [vmem:[#allocation5 + $0xb4] sm:$0xf0]  ;;  %v1829_v52 = vld [vmem:[#allocation5 + $0x34] sm:$0xf]  ;;  %v1567_v53 = vld [vmem:[#allocation5 + $0x38] sm:$0xf0]  ;;  %v1566_v56 = vor.u32 %v1830_v48, %v1565_v47 }
  0x4e   : > { %617 = vmatpush.bf16.msra.mxu2 %v1586_v34  ;;  %v1845_v54 = vld [vmem:[#allocation5 + $0xb4] sm:$0xf]  ;;  %v1631_v55 = vld [vmem:[#allocation5 + $0xb8] sm:$0xf0]  ;;  %v1630_v57 = vor.u32 %v1846_v51, %v1629_v49  ;;  %v1570_v58 = vor.u32 %v1829_v52, %v1567_v53  ;;  %v1557_v59 = vld [vmem:[#allocation5 + $0x20] sm:$0xf] }
  0x4f   : > { %646 = vmatpush.bf16.msra.mxu3 %v1650_v38  ;;  %v1828_v60 = vld [vmem:[#allocation5 + $0x24] sm:$0xf0]  ;;  %v1621_v61 = vld [vmem:[#allocation5 + $0xa0] sm:$0xf]  ;;  %v1634_v62 = vor.u32 %v1845_v54, %v1631_v55  ;;  %v1827_v0 = vld [vmem:[#allocation5 + $0x24] sm:$0xf] }
  0x50   : > { %560 = vmatpush.bf16.msra.mxu0 %v1574_v44  ;;  %v1844_v63 = vld [vmem:[#allocation5 + $0xa4] sm:$0xf0]  ;;  %v1559_v1 = vld [vmem:[#allocation5 + $0x28] sm:$0xf0]  ;;  %v1843_v2 = vld [vmem:[#allocation5 + $0xa4] sm:$0xf]  ;;  %v1558_v4 = vor.u32 %v1828_v60, %v1557_v59 }
  0x51   : > { %589 = vmatpush.bf16.msra.mxu1 %v1638_v45  ;;  %v1623_v3 = vld [vmem:[#allocation5 + $0xa8] sm:$0xf0]  ;;  %v1622_v5 = vor.u32 %v1844_v63, %v1621_v61  ;;  %v1562_v6 = vor.u32 %v1827_v0, %v1559_v1  ;;  %v1549_v7 = vld [vmem:[#allocation5 + $0x10] sm:$0xf]  ;;  %v1826_v8 = vld [vmem:[#allocation5 + $0x14] sm:$0xf0] }
  0x52   : > { %618 = vmatpush.bf16.msra.mxu2 %v1578_v46  ;;  %v1613_v9 = vld [vmem:[#allocation5 + $0x90] sm:$0xf]  ;;  %v1626_v10 = vor.u32 %v1843_v2, %v1623_v3  ;;  %v1842_v11 = vld [vmem:[#allocation5 + $0x94] sm:$0xf0]  ;;  %v1825_v12 = vld [vmem:[#allocation5 + $0x14] sm:$0xf]  ;;  %v1550_v16 = vor.u32 %v1826_v8, %v1549_v7 }
  0x53   : > { %647 = vmatpush.bf16.msra.mxu3 %v1642_v50  ;;  %v1551_v13 = vld [vmem:[#allocation5 + $0x18] sm:$0xf0]  ;;  %v1841_v14 = vld [vmem:[#allocation5 + $0x94] sm:$0xf]  ;;  %v1614_v17 = vor.u32 %v1842_v11, %v1613_v9  ;;  %v1541_v19 = vld [vmem:[#allocation5] sm:$0xf] }
  0x54   : > { %561 = vmatpush.bf16.msra.mxu0 %v1566_v56  ;;  %v1615_v15 = vld [vmem:[#allocation5 + $0x98] sm:$0xf0]  ;;  %v1554_v18 = vor.u32 %v1825_v12, %v1551_v13  ;;  %v1824_v20 = vld [vmem:[#allocation5 + $0x4] sm:$0xf0]  ;;  %v1605_v21 = vld [vmem:[#allocation5 + $0x80] sm:$0xf] }
  0x55   : > { %590 = vmatpush.bf16.msra.mxu1 %v1630_v57  ;;  %v1618_v22 = vor.u32 %v1841_v14, %v1615_v15  ;;  %v1840_v23 = vld [vmem:[#allocation5 + $0x84] sm:$0xf0]  ;;  %v1823_v24 = vld [vmem:[#allocation5 + $0x4] sm:$0xf]  ;;  %v1543_v25 = vld [vmem:[#allocation5 + $0x8] sm:$0xf0]  ;;  %v1542_v28 = vor.u32 %v1824_v20, %v1541_v19 }
  0x56   : > { %619 = vmatpush.bf16.msra.mxu2 %v1570_v58  ;;  %v1839_v26 = vld [vmem:[#allocation5 + $0x84] sm:$0xf]  ;;  %v1607_v27 = vld [vmem:[#allocation5 + $0x88] sm:$0xf0]  ;;  %v337_v30 = vld [vmem:[%s2432_s10 + $0x10] sm:$0xff]  ;;  %v1606_v31 = vor.u32 %v1840_v23, %v1605_v21  ;;  %v1546_v32 = vor.u32 %v1823_v24, %v1543_v25  ;;  %s2468_s27 = scalar_lea.vmem [#allocation10], %s2428_s11 }
  0x57   : > { %648 = vmatpush.bf16.msra.mxu3 %v1634_v62  ;;  %v335_v29 = vld [vmem:[%s2432_s10] sm:$0xff]  ;;  %v336_v33 = vld [vmem:[%s2432_s10 + $0x8] sm:$0xff]  ;;  %v338_v34 = vld [vmem:[%s2432_s10 + $0x18] sm:$0xff]  ;;  %v1610_v35 = vor.u32 %v1839_v26, %v1607_v27  ;;  %s1888_s8 = sshll.u32 %s2336_s25, 7  ;;  %s1366_s30 = sshll.u32 %s2468_s27, 4  ;;  %s1367_s30 = int_to_ptr.vmem [resolvable:$true] %s1366_s30 }
  0x58   : > { %562 = vmatpush.bf16.msra.mxu0 %v1558_v4  ;;  %v351_v36 = vpack.c.bf16 %v337_v30, %v335_v29  ;;  %v352_v37 = vpack.c.bf16 %v338_v34, %v336_v33  ;;  %v339_v38 = vld [vmem:[%s2432_s10 + $0x20] sm:$0xff]  ;;  %v341_v39 = vld [vmem:[%s2432_s10 + $0x30] sm:$0xff]  ;;  %v340_v40 = vld [vmem:[%s2432_s10 + $0x28] sm:$0xff]  ;;  %s1365_s29 = scalar_lea.hbm %s2753_s5, %s1888_s8  ;;  %s1348_s15 = scalar_lea.sflag [#allocation4], %s2425_s17 }
  0x59   : > { %591 = vmatpush.bf16.msra.mxu1 %v1622_v5  ;;  %v342_v41 = vld [vmem:[%s2432_s10 + $0x38] sm:$0xff]  ;;  %v353_v42 = vpack.c.bf16 %v341_v39, %v339_v38  ;;  %v1725_v49 = vld [vmem:[#allocation8 + $0x70] sm:$0xf]  ;;  %v1867_v55 = vld [vmem:[#allocation8 + $0x64] sm:$0xf]  ;;  %s1368_s18 = sshll.u32 %s1365_s29, 4  ;;  %s1369_s18 = int_to_ptr.hbm [resolvable:$true] %s1368_s18 }
  0x5a   : > { %620 = vmatpush.bf16.msra.mxu2 %v1562_v6  ;;  %v354_v43 = vpack.c.bf16 %v342_v41, %v340_v40  ;;  %v1869_v44 = vld [vmem:[#allocation8 + $0x74] sm:$0xf]  ;;  %v1727_v45 = vld [vmem:[#allocation8 + $0x78] sm:$0xf0]  ;;  %v1870_v50 = vld [vmem:[#allocation8 + $0x74] sm:$0xf0] }
  0x5b   : > { %649 = vmatpush.bf16.msra.mxu3 %v1626_v10  ;;  %v1885_v46 = vld [vmem:[#allocation8 + $0xf4] sm:$0xf]  ;;  %v1730_v47 = vor.u32 %v1869_v44, %v1727_v45  ;;  %v1791_v48 = vld [vmem:[#allocation8 + $0xf8] sm:$0xf0]  ;;  %v1726_v52 = vor.u32 %v1870_v50, %v1725_v49  ;;  %v1789_v53 = vld [vmem:[#allocation8 + $0xf0] sm:$0xf] }
  0x5c   : > { %563 = vmatpush.bf16.msra.mxu0 %v1550_v16  ;;  %v1794_v51 = vor.u32 %v1885_v46, %v1791_v48  ;;  %v1886_v54 = vld [vmem:[#allocation8 + $0xf4] sm:$0xf0]  ;;  %v1719_v57 = vld [vmem:[#allocation8 + $0x68] sm:$0xf0]  ;;  %v1883_v58 = vld [vmem:[#allocation8 + $0xe4] sm:$0xf] }
  0x5d   : > { %592 = vmatpush.bf16.msra.mxu1 %v1614_v17  ;;  %v1790_v56 = vor.u32 %v1886_v54, %v1789_v53  ;;  %v1783_v59 = vld [vmem:[#allocation8 + $0xe8] sm:$0xf0]  ;;  %v1722_v60 = vor.u32 %v1867_v55, %v1719_v57  ;;  %v1717_v62 = vld [vmem:[#allocation8 + $0x60] sm:$0xf]  ;;  %v1868_v63 = vld [vmem:[#allocation8 + $0x64] sm:$0xf0] }
  0x5e   : > { %621 = vmatpush.bf16.msra.mxu2 %v1554_v18  ;;  %v1786_v61 = vor.u32 %v1883_v58, %v1783_v59  ;;  %v1781_v0 = vld [vmem:[#allocation8 + $0xe0] sm:$0xf]  ;;  %v345_v2 = vld [vmem:[%s2432_s10 + $0x50] sm:$0xff]  ;;  %v1718_v3 = vor.u32 %v1868_v63, %v1717_v62  ;;  %v1884_v4 = vld [vmem:[#allocation8 + $0xe4] sm:$0xf0]  ;;  %s2177_s16 = sshra.s32 %s1369_s18, 4  ;;  %s2178_s16 = int_to_ptr.hbm [resolvable:$true] %s2177_s16 }
  0x5f   : > { %650 = vmatpush.bf16.msra.mxu3 %v1618_v22  ;;  %v343_v1 = vld [vmem:[%s2432_s10 + $0x40] sm:$0xff]  ;;  %v1865_v5 = vld [vmem:[#allocation8 + $0x54] sm:$0xf]  ;;  %v1782_v7 = vor.u32 %v1884_v4, %v1781_v0  ;;  %v1709_v10 = vld [vmem:[#allocation8 + $0x50] sm:$0xf]  ;;  %s2179_s14 = scalar_lea.hbm %s2178_s16, 128  ;;  %p2184_p7 = scmp.lt.s32.totalorder %s2178_s16, %s2753_s5 }
  0x60   : > { %564 = vmatpush.bf16.msra.mxu0 %v1542_v28  ;;  %v1711_v6 = vld [vmem:[#allocation8 + $0x58] sm:$0xf0]  ;;  %v1881_v8 = vld [vmem:[#allocation8 + $0xd4] sm:$0xf]  ;;  %v1866_v12 = vld [vmem:[#allocation8 + $0x54] sm:$0xf0]  ;;  %v355_v23 = vpack.c.bf16 %v345_v2, %v343_v1  ;;  %p2180_p1 = scmp.ne.s32.totalorder %s2178_s16, %s2179_s14 }
  0x61   : > { %593 = vmatpush.bf16.msra.mxu1 %v1606_v31  ;;  %v1775_v9 = vld [vmem:[#allocation8 + $0xd8] sm:$0xf0]  ;;  %v1714_v11 = vor.u32 %v1865_v5, %v1711_v6  ;;  %v1773_v13 = vld [vmem:[#allocation8 + $0xd0] sm:$0xf]  ;;  %v1882_v14 = vld [vmem:[#allocation8 + $0xd4] sm:$0xf0]  ;;  %v1710_v18 = vor.u32 %v1866_v12, %v1709_v10 }
  0x62   : > { %622 = vmatpush.bf16.msra.mxu2 %v1546_v32  ;;  %v344_v15 = vld [vmem:[%s2432_s10 + $0x48] sm:$0xff]  ;;  %v346_v16 = vld [vmem:[%s2432_s10 + $0x58] sm:$0xff]  ;;  %v1778_v17 = vor.u32 %v1881_v8, %v1775_v9  ;;  %v1774_v19 = vor.u32 %v1882_v14, %v1773_v13  ;;  %v1701_v25 = vld [vmem:[#allocation8 + $0x40] sm:$0xf]  ;;  %p2181_p4 = pnand %p2180_p1, %p2397_p5 }
  0x63   : > { %651 = vmatpush.bf16.msra.mxu3 %v1610_v35  ;;  %565 = vmatmul.bf16.vlgmr.msra.gmra.mxu0 %v351_v36  ;;  %v1863_v20 = vld [vmem:[#allocation8 + $0x44] sm:$0xf]  ;;  %v1703_v21 = vld [vmem:[#allocation8 + $0x48] sm:$0xf0]  ;;  %v1864_v26 = vld [vmem:[#allocation8 + $0x44] sm:$0xf0]  ;;  %v356_v27 = vpack.c.bf16 %v346_v16, %v344_v15 }
  0x64   : > { %594 = vmatmul.bf16.vlgmr.msra.gmra.mxu1 %v352_v37  ;;  %911 = vmatpush.bf16.msrb.mxu0 %v1726_v52  ;;  %v1879_v22 = vld [vmem:[#allocation8 + $0xc4] sm:$0xf]  ;;  %v1767_v24 = vld [vmem:[#allocation8 + $0xc8] sm:$0xf0]  ;;  %v1765_v28 = vld [vmem:[#allocation8 + $0xc0] sm:$0xf]  ;;  %v1706_v30 = vor.u32 %v1863_v20, %v1703_v21  ;;  %v1702_v32 = vor.u32 %v1864_v26, %v1701_v25  ;;  %p2182_p8 = pneg %p2181_p4 }
  0x65   : > { %623 = vmatmul.bf16.vlgmr.msra.gmra.mxu2 %v351_v36  ;;  %940 = vmatpush.bf16.msrb.mxu1 %v1790_v56  ;;  %v1880_v29 = vld [vmem:[#allocation8 + $0xc4] sm:$0xf0]  ;;  %v1770_v31 = vor.u32 %v1879_v22, %v1767_v24  ;;  %v1861_v33 = vld [vmem:[#allocation8 + $0x34] sm:$0xf]  ;;  %v1695_v34 = vld [vmem:[#allocation8 + $0x38] sm:$0xf0] }
  0x66   : > { %652 = vmatmul.bf16.vlgmr.msra.gmra.mxu3 %v352_v37  ;;  %969 = vmatpush.bf16.msrb.mxu2 %v1730_v47  ;;  %v1877_v35 = vld [vmem:[#allocation8 + $0xb4] sm:$0xf]  ;;  %v1766_v36 = vor.u32 %v1880_v29, %v1765_v28  ;;  %v1759_v37 = vld [vmem:[#allocation8 + $0xb8] sm:$0xf0]  ;;  %v1693_v38 = vld [vmem:[#allocation8 + $0x30] sm:$0xf] }
  0x67   : > { %998 = vmatpush.bf16.msrb.mxu3 %v1794_v51  ;;  %v1862_v39 = vld [vmem:[#allocation8 + $0x34] sm:$0xf0]  ;;  %v1757_v40 = vld [vmem:[#allocation8 + $0xb0] sm:$0xf]  ;;  %v1859_v45 = vld [vmem:[#allocation8 + $0x24] sm:$0xf] }
  0x68   : > { %912 = vmatpush.bf16.msrb.mxu0 %v1718_v3  ;;  %v1878_v41 = vld [vmem:[#allocation8 + $0xb4] sm:$0xf0]  ;;  %v1694_v44 = vor.u32 %v1862_v39, %v1693_v38  ;;  %v1687_v46 = vld [vmem:[#allocation8 + $0x28] sm:$0xf0]  ;;  %v1875_v48 = vld [vmem:[#allocation8 + $0xa4] sm:$0xf] }
  0x69   : > { %941 = vmatpush.bf16.msrb.mxu1 %v1782_v7  ;;  %v1758_v47 = vor.u32 %v1878_v41, %v1757_v40  ;;  %v1751_v49 = vld [vmem:[#allocation8 + $0xa8] sm:$0xf0]  ;;  %v1690_v50 = vor.u32 %v1859_v45, %v1687_v46  ;;  %v347_v52 = vld [vmem:[%s2432_s10 + $0x60] sm:$0xff]  ;;  %v350_v55 = vld [vmem:[%s2432_s10 + $0x78] sm:$0xff] }
  0x6a   : > { %970 = vmatpush.bf16.msrb.mxu2 %v1722_v60  ;;  %v1754_v51 = vor.u32 %v1875_v48, %v1751_v49  ;;  %v349_v53 = vld [vmem:[%s2432_s10 + $0x70] sm:$0xff]  ;;  %v348_v54 = vld [vmem:[%s2432_s10 + $0x68] sm:$0xff]  ;;  %v1685_v58 = vld [vmem:[#allocation8 + $0x20] sm:$0xf]  ;;  %s2183_s10 = scalar_lea.hbm %s2753_s5, 512 }
  0x6b   : > { %999 = vmatpush.bf16.msrb.mxu3 %v1786_v61  ;;  %v357_v56 = vpack.c.bf16 %v349_v53, %v347_v52  ;;  %v358_v57 = vpack.c.bf16 %v350_v55, %v348_v54  ;;  %v1860_v59 = vld [vmem:[#allocation8 + $0x24] sm:$0xf0]  ;;  %v1749_v61 = vld [vmem:[#allocation8 + $0xa0] sm:$0xf]  ;;  %v1857_v63 = vld [vmem:[#allocation8 + $0x14] sm:$0xf]  ;;  %p2185_p2 = scmp.lt.s32.totalorder %s2183_s10, %s2179_s14 }
  0x6c   : > { %913 = vmatpush.bf16.msrb.mxu0 %v1710_v18  ;;  %v1686_v60 = vor.u32 %v1860_v59, %v1685_v58  ;;  %v1876_v62 = vld [vmem:[#allocation8 + $0xa4] sm:$0xf0]  ;;  %v1679_v1 = vld [vmem:[#allocation8 + $0x18] sm:$0xf0]  ;;  %v1677_v3 = vld [vmem:[#allocation8 + $0x10] sm:$0xf] }
  0x6d   : > { %942 = vmatpush.bf16.msrb.mxu1 %v1774_v19  ;;  %v1750_v0 = vor.u32 %v1876_v62, %v1749_v61  ;;  %v1682_v2 = vor.u32 %v1857_v63, %v1679_v1  ;;  %v1858_v4 = vld [vmem:[#allocation8 + $0x14] sm:$0xf0]  ;;  %v1855_v6 = vld [vmem:[#allocation8 + $0x4] sm:$0xf]  ;;  %v1671_v7 = vld [vmem:[#allocation8 + $0x8] sm:$0xf0]  ;;  %p2186_p9 = por %p2185_p2, %p2184_p7 }
  0x6e   : > { %971 = vmatpush.bf16.msrb.mxu2 %v1714_v11  ;;  %v1678_v5 = vor.u32 %v1858_v4, %v1677_v3  ;;  %v1669_v8 = vld [vmem:[#allocation8] sm:$0xf]  ;;  %v1873_v9 = vld [vmem:[#allocation8 + $0x94] sm:$0xf]  ;;  %v1743_v10 = vld [vmem:[#allocation8 + $0x98] sm:$0xf0]  ;;  %v1674_v11 = vor.u32 %v1855_v6, %v1671_v7 }
  0x6f   : > { %1000 = vmatpush.bf16.msrb.mxu3 %v1778_v17  ;;  %v1856_v12 = vld [vmem:[#allocation8 + $0x4] sm:$0xf0]  ;;  %v1746_v13 = vor.u32 %v1873_v9, %v1743_v10  ;;  %v1741_v14 = vld [vmem:[#allocation8 + $0x90] sm:$0xf]  ;;  %v1874_v15 = vld [vmem:[#allocation8 + $0x94] sm:$0xf0]  ;;  %p2187_p10 = pnand %p2186_p9, %p2182_p8 }
  0x70   : > { %914 = vmatpush.bf16.msrb.mxu0 %v1702_v32  ;;  %v1670_v16 = vor.u32 %v1856_v12, %v1669_v8  ;;  %v1742_v17 = vor.u32 %v1874_v15, %v1741_v14  ;;  %v1871_v18 = vld [vmem:[#allocation8 + $0x84] sm:$0xf]  ;;  %v1735_v19 = vld [vmem:[#allocation8 + $0x88] sm:$0xf0]  ;;  %v1733_v20 = vld [vmem:[#allocation8 + $0x80] sm:$0xf] }
  0x71   : > { %943 = vmatpush.bf16.msrb.mxu1 %v1766_v36  ;;  %v1738_v21 = vor.u32 %v1871_v18, %v1735_v19  ;;  %v1872_v22 = vld [vmem:[#allocation8 + $0x84] sm:$0xf0]  ;;  %v391_v24 = vld [vmem:[#allocation7] sm:$0x3] }
  0x72   : > { %972 = vmatpush.bf16.msrb.mxu2 %v1706_v30  ;;  %v2462_v25 = vperm.slane %v391_v24, 0  ;;  %v2465_v30 = vperm.slane %v391_v24, 1 }
  0x73   : > { %570 = vmatmul.bf16.gmra.mxu0 %v353_v42  ;;  %1001 = vmatpush.bf16.msrb.mxu3 %v1770_v31 }
  0x74   : > { %599 = vmatmul.bf16.gmra.mxu1 %v354_v43  ;;  %915 = vmatpush.bf16.msrb.mxu0 %v1694_v44 }
  0x75   : > { %628 = vmatmul.bf16.gmra.mxu2 %v353_v42  ;;  %v1698_v42 = vor.u32 %v1861_v33, %v1695_v34  ;;  %944 = vmatpush.bf16.msrb.mxu1 %v1758_v47 }
  0x76   : > { %657 = vmatmul.bf16.gmra.mxu3 %v354_v43  ;;  %v1762_v43 = vor.u32 %v1877_v35, %v1759_v37 }
  0x77   : > { %973 = vmatpush.bf16.msrb.mxu2 %v1698_v42 }
  0x78   : > { %1002 = vmatpush.bf16.msrb.mxu3 %v1762_v43  ;;  %916 = vmatpush.bf16.msrb.mxu0 %v1686_v60 }
  0x79   : > { %945 = vmatpush.bf16.msrb.mxu1 %v1750_v0 }
  0x7b   : > { %974 = vmatpush.bf16.msrb.mxu2 %v1690_v50 }
  0x7c   : > { %1003 = vmatpush.bf16.msrb.mxu3 %v1754_v51  ;;  %917 = vmatpush.bf16.msrb.mxu0 %v1678_v5 }
  0x7d   : > { %946 = vmatpush.bf16.msrb.mxu1 %v1742_v17 }
  0x7f   : > { %975 = vmatpush.bf16.msrb.mxu2 %v1682_v2 }
  0x80   : > { %1004 = vmatpush.bf16.msrb.mxu3 %v1746_v13  ;;  %918 = vmatpush.bf16.msrb.mxu0 %v1670_v16 }
  0x83   : > { %575 = vmatmul.bf16.gmra.mxu0 %v355_v23  ;;  %976 = vmatpush.bf16.msrb.mxu2 %v1674_v11 }
  0x84   : > { %604 = vmatmul.bf16.gmra.mxu1 %v356_v27  ;;  %1005 = vmatpush.bf16.msrb.mxu3 %v1738_v21 }
  0x85   : > { %633 = vmatmul.bf16.gmra.mxu2 %v355_v23  ;;  %v1734_v23 = vor.u32 %v1872_v22, %v1733_v20 }
  0x86   : > { %662 = vmatmul.bf16.gmra.mxu3 %v356_v27 }
  0x87   : > { %947 = vmatpush.bf16.msrb.mxu1 %v1734_v23 }
  0x93   : > { %580 = vmatmul.bf16.gmra.mxu0 %v357_v56 }
  0x94   : > { %609 = vmatmul.bf16.gmra.mxu1 %v358_v57 }
  0x95   : > { %638 = vmatmul.bf16.gmra.mxu2 %v357_v56 }
  0x96   : > { %667 = vmatmul.bf16.gmra.mxu3 %v358_v57 }
  0xe0   : > { %v566_v26 = vpop.f32.mrf.mxu0 }
  0xe1   : > { %v567_v27 = vadd.f32 %v566_v26, %v2462_v25  ;;  %v595_v28 = vpop.f32.mrf.mxu1 }
  0xe3   : > { %v596_v29 = vadd.f32 %v595_v28, %v567_v27 }
  0xe5   : > { %v673_v31 = vmax.f32 %v596_v29, 0.0 }
  0xe7   : > { %689 = vst [vmem:[%s2468_s27] sm:$0xff] %v673_v31 }
  0xe8   : > { %v624_v32 = vpop.f32.mrf.mxu2  ;;  %v568_v35 = vpop.f32.mrf.mxu0 }
  0xe9   : > { %v625_v33 = vadd.f32 %v624_v32, %v2465_v30  ;;  %v653_v34 = vpop.f32.mrf.mxu3  ;;  %v569_v36 = vadd.f32 %v568_v35, %v2462_v25  ;;  %v597_v37 = vpop.f32.mrf.mxu1 }
  0xeb   : > { %v654_v38 = vadd.f32 %v653_v34, %v625_v33  ;;  %v598_v39 = vadd.f32 %v597_v37, %v569_v36 }
  0xed   : > { %v674_v40 = vmax.f32 %v654_v38, 0.0  ;;  %v675_v41 = vmax.f32 %v598_v39, 0.0 }
  0xef   : > { %690 = vst [vmem:[%s2468_s27 + $0x8] sm:$0xff] %v674_v40  ;;  %v705_v42 = vpack.c.bf16 %v675_v41, %v673_v31 }
  0xf0   : > { %691 = vst [vmem:[%s2468_s27 + $0x10] sm:$0xff] %v675_v41  ;;  %v626_v43 = vpop.f32.mrf.mxu2  ;;  %v571_v46 = vpop.f32.mrf.mxu0 }
  0xf1   : > { %v627_v44 = vadd.f32 %v626_v43, %v2465_v30  ;;  %v655_v45 = vpop.f32.mrf.mxu3  ;;  %v572_v47 = vadd.f32 %v571_v46, %v2462_v25  ;;  %v600_v48 = vpop.f32.mrf.mxu1  ;;  %919 = vmatmul.bf16.vlgmr.msrb.gmra.mxu0 %v705_v42  ;;  %977 = vmatmul.bf16.vlgmr.msrb.gmra.mxu2 %v705_v42 }
  0xf3   : > { %v656_v49 = vadd.f32 %v655_v45, %v627_v44  ;;  %v601_v50 = vadd.f32 %v600_v48, %v572_v47 }
  0xf5   : > { %v676_v51 = vmax.f32 %v656_v49, 0.0  ;;  %v677_v52 = vmax.f32 %v601_v50, 0.0 }
  0xf7   : > { %692 = vst [vmem:[%s2468_s27 + $0x18] sm:$0xff] %v676_v51  ;;  %v706_v53 = vpack.c.bf16 %v676_v51, %v674_v40 }
  0xf8   : > { %693 = vst [vmem:[%s2468_s27 + $0x20] sm:$0xff] %v677_v52  ;;  %v629_v54 = vpop.f32.mrf.mxu2  ;;  %v573_v57 = vpop.f32.mrf.mxu0 }
  0xf9   : > { %v630_v55 = vadd.f32 %v629_v54, %v2465_v30  ;;  %v658_v56 = vpop.f32.mrf.mxu3  ;;  %948 = vmatmul.bf16.vlgmr.msrb.gmra.mxu1 %v706_v53  ;;  %1006 = vmatmul.bf16.vlgmr.msrb.gmra.mxu3 %v706_v53  ;;  %v574_v58 = vadd.f32 %v573_v57, %v2462_v25  ;;  %v602_v59 = vpop.f32.mrf.mxu1 }
  0xfb   : > { %v659_v60 = vadd.f32 %v658_v56, %v630_v55  ;;  %v603_v61 = vadd.f32 %v602_v59, %v574_v58 }
  0xfd   : > { %v678_v62 = vmax.f32 %v659_v60, 0.0  ;;  %v679_v63 = vmax.f32 %v603_v61, 0.0 }
  0xff   : > { %694 = vst [vmem:[%s2468_s27 + $0x28] sm:$0xff] %v678_v62  ;;  %v707_v1 = vpack.c.bf16 %v679_v63, %v677_v52 }
 0x100   : > { %695 = vst [vmem:[%s2468_s27 + $0x30] sm:$0xff] %v679_v63  ;;  %v631_v0 = vpop.f32.mrf.mxu2  ;;  %v576_v4 = vpop.f32.mrf.mxu0 }
 0x101   : > { %v632_v2 = vadd.f32 %v631_v0, %v2465_v30  ;;  %v660_v3 = vpop.f32.mrf.mxu3  ;;  %v577_v5 = vadd.f32 %v576_v4, %v2462_v25  ;;  %v605_v6 = vpop.f32.mrf.mxu1  ;;  %924 = vmatmul.bf16.gmra.mxu0 %v707_v1  ;;  %982 = vmatmul.bf16.gmra.mxu2 %v707_v1 }
 0x103   : > { %v661_v7 = vadd.f32 %v660_v3, %v632_v2  ;;  %v606_v8 = vadd.f32 %v605_v6, %v577_v5 }
 0x105   : > { %v680_v9 = vmax.f32 %v661_v7, 0.0  ;;  %v681_v10 = vmax.f32 %v606_v8, 0.0 }
 0x107   : > { %696 = vst [vmem:[%s2468_s27 + $0x38] sm:$0xff] %v680_v9  ;;  %v708_v11 = vpack.c.bf16 %v680_v9, %v678_v62 }
 0x108   : > { %697 = vst [vmem:[%s2468_s27 + $0x40] sm:$0xff] %v681_v10  ;;  %v634_v12 = vpop.f32.mrf.mxu2  ;;  %v578_v15 = vpop.f32.mrf.mxu0 }
 0x109   : > { %v635_v13 = vadd.f32 %v634_v12, %v2465_v30  ;;  %v663_v14 = vpop.f32.mrf.mxu3  ;;  %953 = vmatmul.bf16.gmra.mxu1 %v708_v11  ;;  %1011 = vmatmul.bf16.gmra.mxu3 %v708_v11  ;;  %v579_v16 = vadd.f32 %v578_v15, %v2462_v25  ;;  %v607_v17 = vpop.f32.mrf.mxu1 }
 0x10b   : > { %v664_v18 = vadd.f32 %v663_v14, %v635_v13  ;;  %v608_v19 = vadd.f32 %v607_v17, %v579_v16 }
 0x10d   : > { %v682_v20 = vmax.f32 %v664_v18, 0.0  ;;  %v683_v21 = vmax.f32 %v608_v19, 0.0 }
 0x10f   : > { %698 = vst [vmem:[%s2468_s27 + $0x48] sm:$0xff] %v682_v20  ;;  %v709_v23 = vpack.c.bf16 %v683_v21, %v681_v10 }
 0x110   : > { %699 = vst [vmem:[%s2468_s27 + $0x50] sm:$0xff] %v683_v21  ;;  %v636_v22 = vpop.f32.mrf.mxu2  ;;  %v581_v27 = vpop.f32.mrf.mxu0 }
 0x111   : > { %v637_v24 = vadd.f32 %v636_v22, %v2465_v30  ;;  %v665_v26 = vpop.f32.mrf.mxu3  ;;  %v582_v28 = vadd.f32 %v581_v27, %v2462_v25  ;;  %v610_v29 = vpop.f32.mrf.mxu1  ;;  %929 = vmatmul.bf16.gmra.mxu0 %v709_v23  ;;  %987 = vmatmul.bf16.gmra.mxu2 %v709_v23 }
 0x113   : > { %v666_v31 = vadd.f32 %v665_v26, %v637_v24  ;;  %v611_v32 = vadd.f32 %v610_v29, %v582_v28 }
 0x115   : > { %v684_v33 = vmax.f32 %v666_v31, 0.0  ;;  %v685_v34 = vmax.f32 %v611_v32, 0.0 }
 0x117   : > { %700 = vst [vmem:[%s2468_s27 + $0x58] sm:$0xff] %v684_v33  ;;  %v710_v35 = vpack.c.bf16 %v684_v33, %v682_v20 }
 0x118   : > { %701 = vst [vmem:[%s2468_s27 + $0x60] sm:$0xff] %v685_v34  ;;  %v639_v36 = vpop.f32.mrf.mxu2  ;;  %v583_v39 = vpop.f32.mrf.mxu0 }
 0x119   : > { %v640_v37 = vadd.f32 %v639_v36, %v2465_v30  ;;  %v668_v38 = vpop.f32.mrf.mxu3  ;;  %958 = vmatmul.bf16.gmra.mxu1 %v710_v35  ;;  %1016 = vmatmul.bf16.gmra.mxu3 %v710_v35  ;;  %v584_v40 = vadd.f32 %v583_v39, %v2462_v25  ;;  %v612_v42 = vpop.f32.mrf.mxu1 }
 0x11b   : > { %v669_v41 = vadd.f32 %v668_v38, %v640_v37  ;;  %v613_v43 = vadd.f32 %v612_v42, %v584_v40 }
 0x11d   : > { %v686_v44 = vmax.f32 %v669_v41, 0.0  ;;  %v687_v45 = vmax.f32 %v613_v43, 0.0 }
 0x11f   : > { %702 = vst [vmem:[%s2468_s27 + $0x68] sm:$0xff] %v686_v44  ;;  %v711_v47 = vpack.c.bf16 %v687_v45, %v685_v34 }
 0x120   : > { %703 = vst [vmem:[%s2468_s27 + $0x70] sm:$0xff] %v687_v45  ;;  %v641_v46 = vpop.f32.mrf.mxu2 }
 0x121   : > { %v642_v48 = vadd.f32 %v641_v46, %v2465_v30  ;;  %v670_v49 = vpop.f32.mrf.mxu3  ;;  %934 = vmatmul.bf16.gmra.mxu0 %v711_v47  ;;  %992 = vmatmul.bf16.gmra.mxu2 %v711_v47 }
 0x123   : > { %v671_v25 = vadd.f32 %v670_v49, %v642_v48 }
 0x125   : > { %v688_v50 = vmax.f32 %v671_v25, 0.0 }
 0x127   : > { %704 = vst [vmem:[%s2468_s27 + $0x78] sm:$0xff] %v688_v50  ;;  %v712_v51 = vpack.c.bf16 %v688_v50, %v686_v44 }
 0x129   : > { %963 = vmatmul.bf16.gmra.mxu1 %v712_v51  ;;  %1021 = vmatmul.bf16.gmra.mxu3 %v712_v51 }
 0x12a   : > { %2190 = shalt.err (!%p2187_p10)
}
 0x12b   : > { %s2278_s27 = smov 256   ;;  %s2279_s19 = smov 16   ;;  %v745_v30 = vld [vmem:[%s2752_s4] sm:$0x3] }
 0x12c   : > { %1905 = dma.vmem_to_hbm [thread:$0]  (%p2397_p5), %s1367_s30, 2048, %s1369_s18, %s1348_s15, %s2278_s27, %s2278_s27, %s2279_s19   ;;  %v2525_v53 = vperm.slane %v745_v30, 0  ;;  %v2528_v58 = vperm.slane %v745_v30, 1 }
 0x12d   : > { %s2562_s0 = scalar_lea.vmem [#allocation11], %s2428_s11  ;;  %s1383_s30 = scalar_lea.hbm %s2754_s6, %s1888_s8 }
 0x12e   : > { %s1384_s18 = sshll.u32 %s2562_s0, 4  ;;  %s1386_s15 = sshll.u32 %s1383_s30, 4  ;;  %s1385_s18 = int_to_ptr.vmem [resolvable:$true] %s1384_s18  ;;  %s1387_s15 = int_to_ptr.hbm [resolvable:$true] %s1386_s15 }
 0x12f   : > { %s1353_s25 = scalar_lea.sflag [#allocation12], %s2425_s17  ;;  %s2205_s8 = sshra.s32 %s1387_s15, 4  ;;  %s2206_s8 = int_to_ptr.hbm [resolvable:$true] %s2205_s8 }
 0x130   : > { %s2207_s16 = scalar_lea.hbm %s2206_s8, 128  ;;  %s2211_s9 = scalar_lea.hbm %s2754_s6, 512 }
 0x131   : > { %p2208_p11 = scmp.ne.s32.totalorder %s2206_s8, %s2207_s16  ;;  %p2212_p0 = scmp.lt.s32.totalorder %s2206_s8, %s2754_s6 }
 0x132   : > { %p2213_p3 = scmp.lt.s32.totalorder %s2211_s9, %s2207_s16 }
 0x133   : > { %p2209_p12 = pnand %p2208_p11, %p2397_p5 }
 0x134   : > { %p2214_p1 = por %p2213_p3, %p2212_p0 }
 0x135   : > { %p2210_p13 = pneg %p2209_p12 }
 0x137   : > { %p2215_p4 = pnand %p2214_p1, %p2210_p13 }
 0x16e   : > { %v920_v52 = vpop.f32.mrf.mxu0 }
 0x16f   : > { %v921_v54 = vadd.f32 %v920_v52, %v2525_v53 }
 0x174   : > { %v978_v55 = vpop.f32.mrf.mxu2 }
 0x175   : > { %v979_v61 = vadd.f32 %v978_v55, %v2528_v58 }
 0x176   : > { %v949_v56 = vpop.f32.mrf.mxu1  ;;  %v922_v59 = vpop.f32.mrf.mxu0 }
 0x177   : > { %v950_v57 = vadd.f32 %v949_v56, %v921_v54  ;;  %v923_v63 = vadd.f32 %v922_v59, %v2525_v53 }
 0x179   : > { %v1795_v60 = vmul.f32 -1.442695, %v950_v57 }
 0x17b   : > { %1979 = vpow2.f32 %v1795_v60 }
 0x17c   : > { %v1007_v62 = vpop.f32.mrf.mxu3  ;;  %v980_v1 = vpop.f32.mrf.mxu2 }
 0x17d   : > { %v1008_v0 = vadd.f32 %v1007_v62, %v979_v61  ;;  %v981_v9 = vadd.f32 %v980_v1, %v2528_v58 }
 0x17e   : > { %v951_v2 = vpop.f32.mrf.mxu1  ;;  %v925_v5 = vpop.f32.mrf.mxu0 }
 0x17f   : > { %v1796_v3 = vmul.f32 -1.442695, %v1008_v0  ;;  %v952_v4 = vadd.f32 %v951_v2, %v923_v63  ;;  %v926_v11 = vadd.f32 %v925_v5, %v2525_v53 }
 0x181   : > { %v1980_v6 = vpop.eup %1979  ;;  %1981 = vpow2.f32 %v1796_v3  ;;  %v1797_v7 = vmul.f32 -1.442695, %v952_v4 }
 0x182   : > { %v1075_v8 = vadd.f32 1.0, %v1980_v6 }
 0x183   : > { %1983 = vpow2.f32 %v1797_v7 }
 0x184   : > { %1985 = vrcp.f32 %v1075_v8  ;;  %v1009_v10 = vpop.f32.mrf.mxu3  ;;  %v983_v13 = vpop.f32.mrf.mxu2  ;;  %v1100_v26 = vand.u32 2147483647, %v1075_v8  ;;  %v1102_v27 = vand.u32 2147483648, %v1075_v8  ;;  %vm1096_vm0 = vweird.f32 %v1075_v8 }
 0x185   : > { %v1010_v12 = vadd.f32 %v1009_v10, %v981_v9  ;;  %v984_v28 = vadd.f32 %v983_v13, %v2528_v58 }
 0x186   : > { %v954_v14 = vpop.f32.mrf.mxu1  ;;  %v927_v18 = vpop.f32.mrf.mxu0  ;;  %vm2542_vm2 = vcmp.eq.f32.partialorder %v1100_v26, 8.507059e+37  ;;  %v1103_v42 = vor.u32 1.1754944e-38, %v1102_v27 }
 0x187   : > { %v1982_v15 = vpop.eup %1981  ;;  %v1798_v16 = vmul.f32 -1.442695, %v1010_v12  ;;  %v955_v17 = vadd.f32 %v954_v14, %v926_v11  ;;  %v928_v32 = vadd.f32 %v927_v18, %v2525_v53 }
 0x188   : > { %v2534_v19 = vadd.f32 1.0, %v1982_v15 }
 0x189   : > { %v1984_v20 = vpop.eup %1983  ;;  %1987 = vpow2.f32 %v1798_v16  ;;  %v1799_v21 = vmul.f32 -1.442695, %v955_v17 }
 0x18a   : > { %v1986_v22 = vpop.eup %1985  ;;  %1989 = vrcp.f32 %v2534_v19  ;;  %v2537_v24 = vadd.f32 1.0, %v1984_v20  ;;  %vm1111_vm3 = vweird.f32 %v2534_v19  ;;  %v1115_v48 = vand.u32 2147483647, %v2534_v19 }
 0x18b   : > { %v1092_v23 = vmul.f32 %v1986_v22, %v1075_v8  ;;  %1991 = vpow2.f32 %v1799_v21  ;;  %vm1097_vm1 = vweird.f32 %v1986_v22  ;;  %v1117_v49 = vand.u32 2147483648, %v2534_v19 }
 0x18c   : > { %v1012_v29 = vpop.f32.mrf.mxu3  ;;  %1993 = vrcp.f32 %v2537_v24  ;;  %v985_v33 = vpop.f32.mrf.mxu2  ;;  %vm1098_vm4 = vmor %vm1096_vm0, %vm1097_vm1  ;;  %v1130_v25 = vand.u32 2147483647, %v2537_v24  ;;  %v1132_v57 = vand.u32 2147483648, %v2537_v24  ;;  %vm2567_vm6 = vcmp.eq.f32.partialorder %v1115_v48, 8.507059e+37 }
 0x18d   : > { %v1093_v31 = vsub.f32 1.0, %v1092_v23  ;;  %v1013_v34 = vadd.f32 %v1012_v29, %v984_v28  ;;  %v986_v59 = vadd.f32 %v985_v33, %v2528_v58  ;;  %v1118_v1 = vor.u32 1.1754944e-38, %v1117_v49 }
 0x18e   : > { %v956_v35 = vpop.f32.mrf.mxu1  ;;  %v930_v39 = vpop.f32.mrf.mxu0  ;;  %vm1126_vm7 = vweird.f32 %v2537_v24  ;;  %vm2574_vm10 = vcmp.eq.f32.partialorder %v1130_v25, 8.507059e+37  ;;  %v1133_v13 = vor.u32 1.1754944e-38, %v1132_v57 }
 0x18f   : > { %v1988_v36 = vpop.eup %1987  ;;  %v1094_v37 = vmul.f32 %v1986_v22, %v1093_v31  ;;  %v957_v38 = vadd.f32 %v956_v35, %v928_v32  ;;  %v1800_v44 = vmul.f32 -1.442695, %v1013_v34  ;;  %v931_v62 = vadd.f32 %v930_v39, %v2525_v53 }
 0x190   : > { %v1990_v40 = vpop.eup %1989  ;;  %v2546_v43 = vadd.f32 1.0, %v1988_v36 }
 0x191   : > { %v1992_v45 = vpop.eup %1991  ;;  %v1095_v46 = vadd.f32 %v1986_v22, %v1094_v37  ;;  %v1107_v47 = vmul.f32 %v1990_v40, %v2534_v19  ;;  %v1801_v50 = vmul.f32 -1.442695, %v957_v38  ;;  %vm1112_vm5 = vweird.f32 %v1990_v40 }
 0x192   : > { %1995 = vrcp.f32 %v2546_v43  ;;  %v1994_v51 = vpop.eup %1993  ;;  %v2554_v54 = vadd.f32 1.0, %v1992_v45  ;;  %vm1113_vm8 = vmor %vm1111_vm3, %vm1112_vm5  ;;  %v1145_v10 = vand.u32 2147483647, %v2546_v43  ;;  %vm1141_vm12 = vweird.f32 %v2546_v43 }
 0x193   : > { %v1099_v30 = vsel %vm1098_vm4, %v1986_v22, %v1095_v46  ;;  %v1108_v52 = vsub.f32 1.0, %v1107_v47  ;;  %1997 = vpow2.f32 %v1800_v44  ;;  %v1122_v56 = vmul.f32 %v1994_v51, %v2537_v24 }
 0x194   : > { %v1104_v55 = vsel %vm2542_vm2, %v1103_v42, %v1099_v30  ;;  %v1014_v60 = vpop.f32.mrf.mxu3  ;;  %1999 = vrcp.f32 %v2554_v54  ;;  %v988_v63 = vpop.f32.mrf.mxu2  ;;  %vm1127_vm9 = vweird.f32 %v1994_v51  ;;  %v1147_v23 = vand.u32 2147483648, %v2546_v43 }
 0x195   : > { %1331 = vst [vmem:[%s2562_s0] sm:$0xff] %v1104_v55  ;;  %v1109_v61 = vmul.f32 %v1990_v40, %v1108_v52  ;;  %v1123_v2 = vsub.f32 1.0, %v1122_v56  ;;  %2001 = vpow2.f32 %v1801_v50  ;;  %v1015_v5 = vadd.f32 %v1014_v60, %v986_v59  ;;  %vm1128_vm11 = vmor %vm1126_vm7, %vm1127_vm9 }
 0x196   : > { %v959_v3 = vpop.f32.mrf.mxu1  ;;  %v932_v16 = vpop.f32.mrf.mxu0  ;;  %vm2590_vm13 = vcmp.eq.f32.partialorder %v1145_v10, 8.507059e+37  ;;  %v989_v33 = vadd.f32 %v988_v63, %v2528_v58  ;;  %v1160_v36 = vand.u32 2147483647, %v2554_v54  ;;  %v1148_v44 = vor.u32 1.1754944e-38, %v1147_v23 }
 0x197   : > { %v1110_v4 = vadd.f32 %v1990_v40, %v1109_v61  ;;  %v960_v6 = vadd.f32 %v959_v3, %v931_v62  ;;  %v1124_v8 = vmul.f32 %v1994_v51, %v1123_v2  ;;  %v1802_v15 = vmul.f32 -1.442695, %v1015_v5 }
 0x198   : > { %v1996_v7 = vpop.eup %1995  ;;  %v933_v41 = vadd.f32 %v932_v16, %v2525_v53  ;;  %vm1156_vm1 = vweird.f32 %v2554_v54  ;;  %vm1161_vm3 = vcmp.eq.f32.partialorder %v1160_v36, 8.507059e+37 }
 0x199   : > { %v1998_v11 = vpop.eup %1997  ;;  %v1114_v12 = vsel %vm1113_vm8, %v1990_v40, %v1110_v4  ;;  %v1137_v14 = vmul.f32 %v1996_v7, %v2546_v43  ;;  %v1125_v18 = vadd.f32 %v1994_v51, %v1124_v8  ;;  %v1803_v20 = vmul.f32 -1.442695, %v960_v6 }
 0x19a   : > { %v1119_v17 = vsel %vm2567_vm6, %v1118_v1, %v1114_v12  ;;  %v2582_v19 = vadd.f32 1.0, %v1998_v11  ;;  %v2000_v21 = vpop.eup %1999  ;;  %2003 = vpow2.f32 %v1802_v15  ;;  %vm1142_vm14 = vweird.f32 %v1996_v7 }
 0x19b   : > { %1332 = vst [vmem:[%s2562_s0 + $0x8] sm:$0xff] %v1119_v17  ;;  %v1138_v22 = vsub.f32 1.0, %v1137_v14  ;;  %v2002_v26 = vpop.eup %2001  ;;  %v1129_v27 = vsel %vm1128_vm11, %v1994_v51, %v1125_v18  ;;  %v1152_v29 = vmul.f32 %v2000_v21, %v2554_v54  ;;  %v1162_v40 = vand.u32 2147483648, %v2554_v54  ;;  %vm1143_vm15 = vmor %vm1141_vm12, %vm1142_vm14 }
 0x19c   : > { %2005 = vrcp.f32 %v2582_v19  ;;  %v1017_v31 = vpop.f32.mrf.mxu3  ;;  %v1134_v24 = vsel %vm2574_vm10, %v1133_v13, %v1129_v27  ;;  %v990_v34 = vpop.f32.mrf.mxu2  ;;  %v2601_v37 = vadd.f32 1.0, %v2002_v26  ;;  %vm1157_vm0 = vweird.f32 %v2000_v21 }
 0x19d   : > { %v1139_v32 = vmul.f32 %v1996_v7, %v1138_v22  ;;  %1333 = vst [vmem:[%s2562_s0 + $0x10] sm:$0xff] %v1134_v24  ;;  %v1153_v35 = vsub.f32 1.0, %v1152_v29  ;;  %2007 = vpow2.f32 %v1803_v20  ;;  %v1018_v42 = vadd.f32 %v1017_v31, %v989_v33  ;;  %vm1158_vm2 = vmor %vm1156_vm1, %vm1157_vm0 }
 0x19e   : > { %v961_v38 = vpop.f32.mrf.mxu1  ;;  %2009 = vrcp.f32 %v2601_v37  ;;  %v1175_v48 = vand.u32 2147483647, %v2582_v19  ;;  %v1163_v52 = vor.u32 1.1754944e-38, %v1162_v40  ;;  %v935_v56 = vpop.f32.mrf.mxu0  ;;  %vm1171_vm4 = vweird.f32 %v2582_v19 }
 0x19f   : > { %v1140_v39 = vadd.f32 %v1996_v7, %v1139_v32  ;;  %v1154_v45 = vmul.f32 %v2000_v21, %v1153_v35  ;;  %v962_v49 = vadd.f32 %v961_v38, %v933_v41  ;;  %v1804_v30 = vmul.f32 -1.442695, %v1018_v42 }
 0x1a0   : > { %v2004_v46 = vpop.eup %2003  ;;  %v1177_v59 = vand.u32 2147483648, %v2582_v19  ;;  %vm2622_vm5 = vcmp.eq.f32.partialorder %v1175_v48, 8.507059e+37  ;;  %v1190_v3 = vand.u32 2147483647, %v2601_v37  ;;  %v1192_v4 = vand.u32 2147483648, %v2601_v37 }
 0x1a1   : > { %v1144_v47 = vsel %vm1143_vm15, %v1996_v7, %v1140_v39  ;;  %v1155_v51 = vadd.f32 %v2000_v21, %v1154_v45  ;;  %v2612_v43 = vadd.f32 1.0, %v2004_v46  ;;  %v1805_v0 = vmul.f32 -1.442695, %v962_v49 }
 0x1a2   : > { %v2006_v25 = vpop.eup %2005  ;;  %v1149_v50 = vsel %vm2590_vm13, %v1148_v44, %v1144_v47  ;;  %v991_v8 = vadd.f32 %v990_v34, %v2528_v58  ;;  %v1178_v10 = vor.u32 1.1754944e-38, %v1177_v59  ;;  %vm1186_vm7 = vweird.f32 %v2601_v37 }
 0x1a3   : > { %1334 = vst [vmem:[%s2562_s0 + $0x18] sm:$0xff] %v1149_v50  ;;  %v1167_v55 = vmul.f32 %v2006_v25, %v2582_v19  ;;  %v2008_v54 = vpop.eup %2007  ;;  %v1159_v57 = vsel %vm1158_vm2, %v2000_v21, %v1155_v51  ;;  %2011 = vrcp.f32 %v2612_v43  ;;  %vm1172_vm6 = vweird.f32 %v2006_v25 }
 0x1a4   : > { %v1019_v60 = vpop.f32.mrf.mxu3  ;;  %v1164_v61 = vsel %vm1161_vm3, %v1163_v52, %v1159_v57  ;;  %v2619_v63 = vadd.f32 1.0, %v2008_v54  ;;  %v2010_v1 = vpop.eup %2009  ;;  %2013 = vpow2.f32 %v1804_v30  ;;  %v936_v11 = vadd.f32 %v935_v56, %v2525_v53  ;;  %vm1173_vm8 = vmor %vm1171_vm4, %vm1172_vm6 }
 0x1a5   : > { %v1168_v62 = vsub.f32 1.0, %v1167_v55  ;;  %1335 = vst [vmem:[%s2562_s0 + $0x20] sm:$0xff] %v1164_v61  ;;  %v1182_v7 = vmul.f32 %v2010_v1, %v2601_v37  ;;  %v993_v9 = vpop.f32.mrf.mxu2  ;;  %v1020_v14 = vadd.f32 %v1019_v60, %v991_v8  ;;  %vm2635_vm9 = vcmp.eq.f32.partialorder %v1190_v3, 8.507059e+37 }
 0x1a6   : > { %v964_v5 = vpop.f32.mrf.mxu1  ;;  %2015 = vrcp.f32 %v2619_v63  ;;  %v1193_v17 = vor.u32 1.1754944e-38, %v1192_v4  ;;  %v1205_v18 = vand.u32 2147483647, %v2612_v43  ;;  %vm1187_vm10 = vweird.f32 %v2010_v1  ;;  %v937_v34 = vpop.f32.mrf.mxu0 }
 0x1a7   : > { %v1169_v6 = vmul.f32 %v2006_v25, %v1168_v62  ;;  %v1183_v13 = vsub.f32 1.0, %v1182_v7  ;;  %2017 = vpow2.f32 %v1805_v0  ;;  %v965_v20 = vadd.f32 %v964_v5, %v936_v11  ;;  %vm1188_vm12 = vmor %vm1186_vm7, %vm1187_vm10 }
 0x1a8   : > { %v1207_v19 = vand.u32 2147483648, %v2612_v43  ;;  %v1806_v28 = vmul.f32 -1.442695, %v1020_v14  ;;  %v994_v29 = vadd.f32 %v993_v9, %v2528_v58  ;;  %vm1201_vm11 = vweird.f32 %v2612_v43 }
 0x1a9   : > { %v1170_v12 = vadd.f32 %v2006_v25, %v1169_v6  ;;  %v2012_v15 = vpop.eup %2011  ;;  %v1184_v22 = vmul.f32 %v2010_v1, %v1183_v13  ;;  %vm2652_vm13 = vcmp.eq.f32.partialorder %v1205_v18, 8.507059e+37  ;;  %v1807_v38 = vmul.f32 -1.442695, %v965_v20 }
 0x1aa   : > { %v1197_v23 = vmul.f32 %v2012_v15, %v2612_v43  ;;  %v2014_v26 = vpop.eup %2013  ;;  %2019 = vpow2.f32 %v1806_v28  ;;  %vm1202_vm14 = vweird.f32 %v2012_v15  ;;  %v1208_v37 = vor.u32 1.1754944e-38, %v1207_v19 }
 0x1ab   : > { %v1174_v21 = vsel %vm1173_vm8, %v2006_v25, %v1170_v12  ;;  %v1185_v24 = vadd.f32 %v2010_v1, %v1184_v22  ;;  %v2647_v33 = vadd.f32 1.0, %v2014_v26  ;;  %v938_v47 = vadd.f32 %v937_v34, %v2525_v53  ;;  %vm1203_vm15 = vmor %vm1201_vm11, %vm1202_vm14 }
 0x1ac   : > { %v1179_v27 = vsel %vm2622_vm5, %v1178_v10, %v1174_v21  ;;  %v1022_v31 = vpop.f32.mrf.mxu3  ;;  %v1198_v32 = vsub.f32 1.0, %v1197_v23  ;;  %v2016_v35 = vpop.eup %2015  ;;  %v1220_v25 = vand.u32 2147483647, %v2619_v63  ;;  %v1222_v30 = vand.u32 2147483648, %v2619_v63 }
 0x1ad   : > { %1336 = vst [vmem:[%s2562_s0 + $0x28] sm:$0xff] %v1179_v27  ;;  %v1023_v39 = vadd.f32 %v1022_v31, %v994_v29  ;;  %v2018_v40 = vpop.eup %2017  ;;  %v1189_v41 = vsel %vm1188_vm12, %v2010_v1, %v1185_v24  ;;  %v1212_v44 = vmul.f32 %v2016_v35, %v2619_v63  ;;  %2021 = vrcp.f32 %v2647_v33  ;;  %v995_v51 = vpop.f32.mrf.mxu2 }
 0x1ae   : > { %v1199_v42 = vmul.f32 %v2012_v15, %v1198_v32  ;;  %v966_v45 = vpop.f32.mrf.mxu1  ;;  %v1194_v46 = vsel %vm2635_vm9, %v1193_v17, %v1189_v41  ;;  %v2663_v50 = vadd.f32 1.0, %v2018_v40  ;;  %2023 = vpow2.f32 %v1807_v38 }
 0x1af   : > { %1337 = vst [vmem:[%s2562_s0 + $0x30] sm:$0xff] %v1194_v46  ;;  %v1213_v49 = vsub.f32 1.0, %v1212_v44  ;;  %v1808_v52 = vmul.f32 -1.442695, %v1023_v39  ;;  %v967_v55 = vadd.f32 %v966_v45, %v938_v47  ;;  %vm1217_vm0 = vweird.f32 %v2016_v35 }
 0x1b0   : > { %v1200_v48 = vadd.f32 %v2012_v15, %v1199_v42  ;;  %2025 = vrcp.f32 %v2663_v50  ;;  %v2020_v53 = vpop.eup %2019  ;;  %vm1216_vm1 = vweird.f32 %v2619_v63  ;;  %v996_v59 = vadd.f32 %v995_v51, %v2528_v58 }
 0x1b1   : > { %v1214_v54 = vmul.f32 %v2016_v35, %v1213_v49  ;;  %v2674_v61 = vadd.f32 1.0, %v2020_v53  ;;  %2027 = vpow2.f32 %v1808_v52  ;;  %v1809_v62 = vmul.f32 -1.442695, %v967_v55  ;;  %vm1218_vm2 = vmor %vm1216_vm1, %vm1217_vm0 }
 0x1b2   : > { %v1204_v56 = vsel %vm1203_vm15, %v2012_v15, %v1200_v48  ;;  %v1223_v1 = vor.u32 1.1754944e-38, %v1222_v30  ;;  %vm1221_vm3 = vcmp.eq.f32.partialorder %v1220_v25, 8.507059e+37  ;;  %v1237_v9 = vand.u32 2147483648, %v2647_v33 }
 0x1b3   : > { %v1209_v57 = vsel %vm2652_vm13, %v1208_v37, %v1204_v56  ;;  %v1215_v60 = vadd.f32 %v2016_v35, %v1214_v54  ;;  %v2022_v0 = vpop.eup %2021  ;;  %2029 = vrcp.f32 %v2674_v61  ;;  %v1235_v13 = vand.u32 2147483647, %v2647_v33 }
 0x1b4   : > { %v1024_v43 = vpop.f32.mrf.mxu3  ;;  %1338 = vst [vmem:[%s2562_s0 + $0x38] sm:$0xff] %v1209_v57  ;;  %v1227_v4 = vmul.f32 %v2022_v0, %v2647_v33  ;;  %v2024_v63 = vpop.eup %2023  ;;  %2031 = vpow2.f32 %v1809_v62  ;;  %vm1232_vm4 = vweird.f32 %v2022_v0  ;;  %vm1231_vm5 = vweird.f32 %v2647_v33 }
 0x1b5   : > { %v1025_v2 = vadd.f32 %v1024_v43, %v996_v59  ;;  %v1219_v3 = vsel %vm1218_vm2, %v2016_v35, %v1215_v60  ;;  %v2679_v7 = vadd.f32 1.0, %v2024_v63  ;;  %v1250_v18 = vand.u32 2147483647, %v2663_v50  ;;  %vm1233_vm6 = vmor %vm1231_vm5, %vm1232_vm4 }
 0x1b6   : > { %v1224_v58 = vsel %vm1221_vm3, %v1223_v1, %v1219_v3  ;;  %v2026_v5 = vpop.eup %2025  ;;  %v1228_v6 = vsub.f32 1.0, %v1227_v4  ;;  %v1252_v20 = vand.u32 2147483648, %v2663_v50  ;;  %v1238_v21 = vor.u32 1.1754944e-38, %v1237_v9 }
 0x1b7   : > { %1339 = vst [vmem:[%s2562_s0 + $0x40] sm:$0xff] %v1224_v58  ;;  %v1810_v8 = vmul.f32 -1.442695, %v1025_v2  ;;  %v1242_v10 = vmul.f32 %v2026_v5, %v2663_v50  ;;  %v2028_v11 = vpop.eup %2027  ;;  %2033 = vrcp.f32 %v2679_v7  ;;  %vm1247_vm7 = vweird.f32 %v2026_v5 }
 0x1b8   : > { %v1229_v12 = vmul.f32 %v2022_v0, %v1228_v6  ;;  %v2685_v15 = vadd.f32 1.0, %v2028_v11  ;;  %vm1236_vm8 = vcmp.eq.f32.partialorder %v1235_v13, 8.507059e+37  ;;  %vm1246_vm9 = vweird.f32 %v2663_v50 }
 0x1b9   : > { %v1243_v14 = vsub.f32 1.0, %v1242_v10  ;;  %2035 = vpow2.f32 %v1810_v8  ;;  %v2030_v16 = vpop.eup %2029  ;;  %v1265_v31 = vand.u32 2147483647, %v2674_v61  ;;  %vm1248_vm10 = vmor %vm1246_vm9, %vm1247_vm7  ;;  %vm1251_vm11 = vcmp.eq.f32.partialorder %v1250_v18, 8.507059e+37 }
 0x1ba   : > { %v1230_v17 = vadd.f32 %v2022_v0, %v1229_v12  ;;  %v1257_v23 = vmul.f32 %v2030_v16, %v2674_v61  ;;  %v2032_v26 = vpop.eup %2031  ;;  %2037 = vrcp.f32 %v2685_v15  ;;  %v1253_v32 = vor.u32 1.1754944e-38, %v1252_v20 }
 0x1bb   : > { %v1244_v22 = vmul.f32 %v2026_v5, %v1243_v14  ;;  %v1267_v33 = vand.u32 2147483648, %v2674_v61  ;;  %v1089_v34 = vadd.f32 1.0, %v2032_v26  ;;  %vm1262_vm12 = vweird.f32 %v2030_v16 }
 0x1bc   : > { %v1234_v27 = vsel %vm1233_vm6, %v2022_v0, %v1230_v17  ;;  %v1258_v29 = vsub.f32 1.0, %v1257_v23  ;;  %vm1261_vm13 = vweird.f32 %v2674_v61  ;;  %vm1266_vm14 = vcmp.eq.f32.partialorder %v1265_v31, 8.507059e+37 }
 0x1bd   : > { %v1239_v19 = vsel %vm1236_vm8, %v1238_v21, %v1234_v27  ;;  %v1245_v28 = vadd.f32 %v2026_v5, %v1244_v22  ;;  %v2034_v24 = vpop.eup %2033  ;;  %2039 = vrcp.f32 %v1089_v34  ;;  %vm1263_vm15 = vmor %vm1261_vm13, %vm1262_vm12  ;;  %v1268_v45 = vor.u32 1.1754944e-38, %v1267_v33 }
 0x1be   : > { %1340 = vst [vmem:[%s2562_s0 + $0x48] sm:$0xff] %v1239_v19  ;;  %v1259_v38 = vmul.f32 %v2030_v16, %v1258_v29  ;;  %v1272_v39 = vmul.f32 %v2034_v24, %v2679_v7  ;;  %v1280_v46 = vand.u32 2147483647, %v2679_v7  ;;  %v1282_v37 = vand.u32 2147483648, %v2679_v7 }
 0x1bf   : > { %v2036_v35 = vpop.eup %2035  ;;  %v1249_v36 = vsel %vm1248_vm10, %v2026_v5, %v1245_v28  ;;  %vm1277_vm0 = vweird.f32 %v2034_v24  ;;  %vm1276_vm1 = vweird.f32 %v2679_v7  ;;  %v1295_v56 = vand.u32 2147483647, %v2685_v15 }
 0x1c0   : > { %v1254_v40 = vsel %vm1251_vm11, %v1253_v32, %v1249_v36  ;;  %v1260_v41 = vadd.f32 %v2030_v16, %v1259_v38  ;;  %v1273_v42 = vsub.f32 1.0, %v1272_v39  ;;  %v2038_v44 = vpop.eup %2037  ;;  %v1090_v47 = vadd.f32 1.0, %v2036_v35  ;;  %vm1278_vm2 = vmor %vm1276_vm1, %vm1277_vm0 }
 0x1c1   : > { %1341 = vst [vmem:[%s2562_s0 + $0x50] sm:$0xff] %v1254_v40  ;;  %v1287_v25 = vmul.f32 %v2038_v44, %v2685_v15  ;;  %vm1281_vm3 = vcmp.eq.f32.partialorder %v1280_v46, 8.507059e+37  ;;  %v1283_v55 = vor.u32 1.1754944e-38, %v1282_v37  ;;  %v1297_v54 = vand.u32 2147483648, %v2685_v15 }
 0x1c2   : > { %v1264_v48 = vsel %vm1263_vm15, %v2030_v16, %v1260_v41  ;;  %v1274_v49 = vmul.f32 %v2034_v24, %v1273_v42  ;;  %2041 = vrcp.f32 %v1090_v47  ;;  %vm1292_vm4 = vweird.f32 %v2038_v44 }
 0x1c3   : > { %v1269_v50 = vsel %vm1266_vm14, %v1268_v45, %v1264_v48  ;;  %v1288_v30 = vsub.f32 1.0, %v1287_v25  ;;  %v2040_v52 = vpop.eup %2039  ;;  %vm1291_vm5 = vweird.f32 %v2685_v15  ;;  %vm1296_vm7 = vcmp.eq.f32.partialorder %v1295_v56, 8.507059e+37 }
 0x1c4   : > { %1342 = vst [vmem:[%s2562_s0 + $0x58] sm:$0xff] %v1269_v50  ;;  %v1275_v51 = vadd.f32 %v2034_v24, %v1274_v49  ;;  %v1302_v59 = vmul.f32 %v2040_v52, %v1089_v34  ;;  %vm1293_vm6 = vmor %vm1291_vm5, %vm1292_vm4  ;;  %v1298_v0 = vor.u32 1.1754944e-38, %v1297_v54  ;;  %v1310_v1 = vand.u32 2147483647, %v1089_v34 }
 0x1c5   : > { %v1289_v57 = vmul.f32 %v2038_v44, %v1288_v30  ;;  %v1312_v2 = vand.u32 2147483648, %v1089_v34  ;;  %vm1307_vm8 = vweird.f32 %v2040_v52  ;;  %vm1306_vm9 = vweird.f32 %v1089_v34 }
 0x1c6   : > { %v1279_v53 = vsel %vm1278_vm2, %v2034_v24, %v1275_v51  ;;  %v1303_v61 = vsub.f32 1.0, %v1302_v59  ;;  %vm1308_vm10 = vmor %vm1306_vm9, %vm1307_vm8  ;;  %vm1311_vm11 = vcmp.eq.f32.partialorder %v1310_v1, 8.507059e+37  ;;  %v1327_v8 = vand.u32 2147483648, %v1090_v47 }
 0x1c7   : > { %v1284_v43 = vsel %vm1281_vm3, %v1283_v55, %v1279_v53  ;;  %v1290_v60 = vadd.f32 %v2038_v44, %v1289_v57  ;;  %v1313_v7 = vor.u32 1.1754944e-38, %v1312_v2  ;;  %v1325_v11 = vand.u32 2147483647, %v1090_v47 }
 0x1c8   : > { %1343 = vst [vmem:[%s2562_s0 + $0x60] sm:$0xff] %v1284_v43  ;;  %v2042_v62 = vpop.eup %2041  ;;  %v1304_v4 = vmul.f32 %v2040_v52, %v1303_v61  ;;  %vm1321_vm13 = vweird.f32 %v1090_v47  ;;  %v1328_v14 = vor.u32 1.1754944e-38, %v1327_v8 }
 0x1c9   : > { %v1294_v3 = vsel %vm1293_vm6, %v2038_v44, %v1290_v60  ;;  %v1317_v63 = vmul.f32 %v2042_v62, %v1090_v47  ;;  %vm1322_vm12 = vweird.f32 %v2042_v62  ;;  %vm1326_vm15 = vcmp.eq.f32.partialorder %v1325_v11, 8.507059e+37 }
 0x1ca   : > { %v1299_v58 = vsel %vm1296_vm7, %v1298_v0, %v1294_v3  ;;  %v1305_v5 = vadd.f32 %v2040_v52, %v1304_v4  ;;  %vm1323_vm14 = vmor %vm1321_vm13, %vm1322_vm12 }
 0x1cb   : > { %1344 = vst [vmem:[%s2562_s0 + $0x68] sm:$0xff] %v1299_v58  ;;  %v1318_v6 = vsub.f32 1.0, %v1317_v63 }
 0x1cc   : > { %v1309_v9 = vsel %vm1308_vm10, %v2040_v52, %v1305_v5 }
 0x1cd   : > { %v1319_v10 = vmul.f32 %v2042_v62, %v1318_v6  ;;  %v1314_v12 = vsel %vm1311_vm11, %v1313_v7, %v1309_v9 }
 0x1ce   : > { %1345 = vst [vmem:[%s2562_s0 + $0x70] sm:$0xff] %v1314_v12 }
 0x1cf   : > { %v1320_v13 = vadd.f32 %v2042_v62, %v1319_v10 }
 0x1d1   : > { %v1324_v15 = vsel %vm1323_vm14, %v2042_v62, %v1320_v13 }
 0x1d2   : > { %v1329_v16 = vsel %vm1326_vm15, %v1328_v14, %v1324_v15 }
 0x1d3   : > { %1346 = vst [vmem:[%s2562_s0 + $0x78] sm:$0xff] %v1329_v16 }
 0x1d4   : > { %2218 = shalt.err (!%p2215_p4)
}
 0x1d5   : > { %1906 = dma.vmem_to_hbm [thread:$0]  (%p2397_p5), %s1385_s18, 2048, %s1387_s15, %s1353_s25, %s2278_s27, %s2278_s27, %s2279_s19  }
 0x1d6 PF: > { %p1937_p8 = scmp.ge.s32.totalorder %s2269_s24, 2  ;;  %s1401_s17 = sand.u32 1, %s2257_s21  }
 0x1d7   : > { %s1402_s29 = scalar_lea.sflag [#allocation4], %s1401_s17 }
 0x1d8   : > { %p1924_p7 = pnand %p1937_p8, %p2350_p6 }
 0x1da   : > { %p1925_p2 = pneg %p1924_p7 }
 0x1dc   : > { %2248 = dma.done.wait (%p1925_p2), %s1402_s29, 2048  }
 0x1dd   : > { %2250 = vsyncadd (%p1925_p2), %s1402_s29, 4294965248  ;;  %s1412_s0 = scalar_lea.sflag [#allocation12], %s1401_s17 }
 0x1de   : > { %2252 = dma.done.wait (%p1925_p2), %s1412_s0, 2048  }
 0x1df   : > { %2254 = vsyncadd (%p1925_p2), %s1412_s0, 4294965248  ;;  %p25_p5 = scmp.ge.s32.totalorder %s2381_s7, 6   ;;  %s2779_s21 = smov %s2261_s22 }
 0x1e0   : > { %s2780_s22 = smov %s2265_s23  ;;  %s2781_s23 = smov %s2393_s12 }
 0x1e1   : > { %s2782_s24 = smov %s2381_s7  ;;  %27 = sbr.rel (!%p25_p5) target bundleno = 12 (0xc), region = 114 }
 0x1e6   :  { %1418 = vsyncpa [#allocation3], 1 }
 0x1e7   :  { %1420 = vsyncpa [#allocation3 + $0x1], 1 }
 0x1e8   :  { %1421 = vsyncpa [#allocation6], 1 }
 0x1e9   :  { %1422 = vsyncpa [#allocation9], 1 }
 0x1ea   :  { %1423 = vsyncpa [#allocation4], 1 }
 0x1eb   :  { %1425 = vsyncpa [#allocation4 + $0x1], 1 }
 0x1ec   :  { %1426 = vsyncpa [#allocation12], 1 }
 0x1ed   :  { %1428 = vsyncpa [#allocation12 + $0x1], 1 }

</bundles_post_ra>
